<compile_context>
chip_gen: v5e
topology: v5e:2x2
jax: 0.10.0
libtpu: 0.0.40
codegen_flags: <defaults>
</compile_context>

<pallas_src>
import functools
import numpy as np
import jax
import jax.numpy as jnp
from jax.experimental import pallas as pl
from jax.experimental.pallas import tpu as pltpu


# ----------------------- deterministic parameter init -----------------------
def quaternion_init_np(in_features, out_features, kernel_size, seed=0, criterion="glorot"):
    """Mirrors quaternion_init (chi(4) modulus sampled as the norm of 4 gaussians to avoid a
    scipy dependency).  Deterministic via a fixed numpy seed (the torch module seeds randomly)."""
    kh, kw = kernel_size
    receptive_field = kh * kw
    fan_in = in_features * receptive_field
    fan_out = out_features * receptive_field
    if criterion == "glorot":
        s = 1.0 / np.sqrt(2.0 * (fan_in + fan_out))
    else:  # 'he'
        s = 1.0 / np.sqrt(2.0 * fan_in)

    rng = np.random.RandomState(seed)
    kernel_shape = (out_features, in_features, kh, kw)

    normals = rng.normal(0.0, s, size=(4,) + kernel_shape)
    modulus = np.sqrt(np.sum(normals ** 2, axis=0))

    n = int(np.prod(kernel_shape))
    v_i = rng.uniform(-1.0, 1.0, n)
    v_j = rng.uniform(-1.0, 1.0, n)
    v_k = rng.uniform(-1.0, 1.0, n)
    norm = np.sqrt(v_i ** 2 + v_j ** 2 + v_k ** 2 + 1e-4)
    v_i = (v_i / norm).reshape(kernel_shape)
    v_j = (v_j / norm).reshape(kernel_shape)
    v_k = (v_k / norm).reshape(kernel_shape)

    phase = rng.uniform(low=-np.pi, high=np.pi, size=kernel_shape)
    weight_r = modulus * np.cos(phase)
    weight_i = modulus * v_i * np.sin(phase)
    weight_j = modulus * v_j * np.sin(phase)
    weight_k = modulus * v_k * np.sin(phase)
    return (weight_r.astype(np.float32), weight_i.astype(np.float32),
            weight_j.astype(np.float32), weight_k.astype(np.float32))


def make_quaternion_weight(r, i, j, k):
    """Hamilton-product kernel assembly, exactly as quaternion_conv does.
    r,i,j,k: (O/4, I/4, KH, KW) -> (O, I, KH, KW) in the module's channel order."""
    row_r = np.concatenate([r, -i, -j, -k], axis=1)
    row_i = np.concatenate([i,  r, -k,  j], axis=1)
    row_j = np.concatenate([j,  k,  r, -i], axis=1)
    row_k = np.concatenate([k, -j,  i,  r], axis=1)
    return np.concatenate([row_r, row_i, row_j, row_k], axis=0)


def build_qconvlstm_gemm_params(w_quat, bias, input_dim, hidden_dim, W, KH, KW):
    """Bake into one block-Toeplitz GEMM weight:
      (a) the module's quaternion interleave of [x, h] input channels,
      (b) the gate regrouping (per-component i/f/o/g -> contiguous i|f|o|g slabs),
      (c) the KW horizontal taps, including 'same' W-padding (zero rows).
    Result:  w_gemm[kh, w_in*Cin + cin, g*(W*hd) + w*hd + ch],  shape (KH, W*Cin, 4*W*hd),
    so the gate slabs share the lane-dense (B*H, W*hd) layout of the recurrent state."""
    Cx, Ch = input_dim, hidden_dim
    Cin, hd = Cx + Ch, hidden_dim
    Cout = 4 * hd
    cx4, ch4, hd4 = Cx // 4, Ch // 4, hd // 4
    pw = KW // 2

    # input-channel permutation: ours [x | h] -> module's [x_r h_r x_i h_i x_j h_j x_k h_k]
    in_perm = np.empty(Cin, np.int64)
    for jc in range(Cin):
        if jc < Cx:
            q, a = divmod(jc, cx4)
            in_perm[jc] = q * (cx4 + ch4) + a
        else:
            q, a = divmod(jc - Cx, ch4)
            in_perm[jc] = q * (cx4 + ch4) + cx4 + a

    # output-channel permutation: ours gate-major [i|f|o|g] (each [r i j k] inside)
    # <- module's quaternion-major [r|i|j|k] (each [i f o g] inside)
    out_perm = np.empty(Cout, np.int64)
    for g in range(4):
        for q in range(4):
            for a in range(hd4):
                out_perm[g * hd + q * hd4 + a] = q * hd + g * hd4 + a

    w_p = w_quat[out_perm][:, in_perm]                     # (Cout, Cin, KH, KW)
    b_p = bias[out_perm]                                   # (Cout,)

    G = W * hd
    w_gemm = np.zeros((KH, W * Cin, 4 * G), np.float32)
    for kh in range(KH):
        for kw in range(KW):
            blk = w_p[:, :, kh, kw]                        # (Cout, Cin)
            for w in range(W):
                w_in = w + kw - pw
                if not (0 <= w_in < W):                    # tap falls on width padding -> zero
                    continue
                for g in range(4):
                    w_gemm[kh,
                           w_in * Cin:(w_in + 1) * Cin,
                           g * G + w * hd: g * G + (w + 1) * hd] = blk[g * hd:(g + 1) * hd, :].T

    b_gemm = np.zeros((1, 4 * G), np.float32)
    for g in range(4):
        b_gemm[0, g * G:(g + 1) * G] = np.tile(b_p[g * hd:(g + 1) * hd], W)
    return w_gemm, b_gemm


# ------------------------------- Pallas kernel -------------------------------
def _build_qconvlstm_call(B, H, W, Cin, hidden, KH, dtype=jnp.float32):
    ph = KH // 2
    Hp = H + 2 * ph
    M = B * H                 # GEMM M: batch folded in (no per-batch grid loop)
    K = W * Cin               # GEMM K: a full image row (W-padding taps are zero weight rows)
    G = W * hidden            # per-gate lane width (128 in the demo config -> lane dense)
    N = 4 * G                 # i | f | o | g gate slabs, lane-contiguous

    def kernel(comb_ref, c_ref, w_ref, b_ref, h_out_ref, c_out_ref, buf_ref):
        # Fused 'same' padding along H: zero-fill the scratch, place the image in the middle.
        buf_ref[...] = jnp.zeros(buf_ref.shape, buf_ref.dtype)
        buf_ref[:, ph:ph + H, :] = comb_ref[...]
        xp = buf_ref[...]                                        # (B, Hp, W*Cin)

        # Conv-as-GEMM: KH matmuls (K=192, N=512) instead of KH*KW tiny (K=8, N=8) dots.
        # Bias folded into the accumulator init (single hoisted broadcast).
        acc = jnp.broadcast_to(b_ref[...], (M, N))
        for kh in range(KH):                                     # static unroll, KH == 3
            rows = xp[:, kh:kh + H, :].reshape(M, K)             # leading-dim merge only
            acc = acc + jnp.dot(rows, w_ref[kh],
                                preferred_element_type=jnp.float32)

        # LSTM gate math: every operand is a dense (M, 128) slab (no masked partial stores).
        sig = lambda v: 1.0 / (1.0 + jnp.exp(-v))
        i_g = sig(acc[:, 0 * G:1 * G])
        f_g = sig(acc[:, 1 * G:2 * G])
        o_g = sig(acc[:, 2 * G:3 * G])
        g_g = jnp.tanh(acc[:, 3 * G:4 * G])

        c_cur = c_ref[...]
        c_next = f_g * c_cur + i_g * g_g
        h_next = o_g * jnp.tanh(c_next)
        h_out_ref[...] = h_next.astype(h_out_ref.dtype)
        c_out_ref[...] = c_next.astype(c_out_ref.dtype)

    return pl.pallas_call(
        kernel,
        out_shape=(jax.ShapeDtypeStruct((M, G), dtype),
                   jax.ShapeDtypeStruct((M, G), dtype)),
        grid=(1,),                                   # whole problem in one step (B folded in M)
        in_specs=[
            pl.BlockSpec((B, H, W * Cin), lambda i: (0, 0, 0)),   # combined [x|h], NHWC row-flat
            pl.BlockSpec((M, G), lambda i: (0, 0)),               # c_cur, lane dense
            pl.BlockSpec((KH, K, N), lambda i: (0, 0, 0)),        # block-Toeplitz GEMM weight
            pl.BlockSpec((1, N), lambda i: (0, 0)),               # bias (gate-major, lane dense)
        ],
        out_specs=(pl.BlockSpec((M, G), lambda i: (0, 0)),
                   pl.BlockSpec((M, G), lambda i: (0, 0))),
        scratch_shapes=[pltpu.VMEM((B, Hp, W * Cin), jnp.float32)],
        compiler_params=pltpu.CompilerParams(
            dimension_semantics=("arbitrary",),
            # TODO(synk): at production H/W add a row-tiling grid axis and re-derive this
            # limit (v7x has only 64 MiB physical VMEM).
            vmem_limit_bytes=32 * 1024 * 1024),
    )


# --------------------------------- wrappers ----------------------------------
def qconvlstm_cell_nhwc(x_nhwc, h_nhwc, c_nhwc, w_gemm, b_gemm, kernel_hw):
    """Fused QConvLSTMCell forward on NHWC tensors -> (h_next, c_next) in NHWC."""
    B, H, W, Cx = x_nhwc.shape
    Ch = h_nhwc.shape[-1]
    Cin = Cx + Ch
    KH, _ = kernel_hw
    # plain [x | h] channel order; the quaternion interleave is baked into w_gemm's rows.
    comb = jnp.concatenate([x_nhwc, h_nhwc], axis=-1).reshape(B, H, W * Cin)
    c_flat = c_nhwc.reshape(B * H, W * Ch)           # free reshape: lane index = w*hidden + ch
    call = _build_qconvlstm_call(B, H, W, Cin, Ch, KH, dtype=x_nhwc.dtype)
    h_flat, c_next_flat = call(comb, c_flat, w_gemm, b_gemm)
    return h_flat.reshape(B, H, W, Ch), c_next_flat.reshape(B, H, W, Ch)


def qconvlstm_cell_nchw(x, h, c, w_gemm, b_gemm, kernel_hw):
    """PyTorch-facing NCHW adapter (a real model should stay NHWC end-to-end so these
    transposes are not paid every step)."""
    to_nhwc = lambda t: jnp.transpose(t, (0, 2, 3, 1))
    to_nchw = lambda t: jnp.transpose(t, (0, 3, 1, 2))
    hn, cn = qconvlstm_cell_nhwc(to_nhwc(x), to_nhwc(h), to_nhwc(c), w_gemm, b_gemm, kernel_hw)
    return to_nchw(hn), to_nchw(cn)


# ------------------------------ pure-JAX reference ----------------------------
def qconvlstm_cell_reference(x, h, c, w_quat, bias, hidden_dim, kernel_hw):
    """Module-faithful reference (NCHW, XLA conv, explicit quaternion channel shuffles)."""
    KH, KW = kernel_hw

    def quarter(t, q):
        n = t.shape[1] // 4
        return t[:, q * n:(q + 1) * n]

    combined = jnp.concatenate(
        [quarter(x, 0), quarter(h, 0), quarter(x, 1), quarter(h, 1),
         quarter(x, 2), quarter(h, 2), quarter(x, 3), quarter(h, 3)], axis=1)
    conv = jax.lax.conv_general_dilated(
        combined, w_quat, window_strides=(1, 1),
        padding=[(KH // 2, KH // 2), (KW // 2, KW // 2)],
        dimension_numbers=("NCHW", "OIHW", "NCHW"))
    conv = conv + bias[None, :, None, None]

    hd, hd4 = hidden_dim, hidden_dim // 4
    comps = [conv[:, q * hd:(q + 1) * hd] for q in range(4)]      # r, i, j, k components

    def gate(g):
        return jnp.concatenate([p[:, g * hd4:(g + 1) * hd4] for p in comps], axis=1)

    sig = lambda v: 1.0 / (1.0 + jnp.exp(-v))
    i_g, f_g, o_g = sig(gate(0)), sig(gate(1)), sig(gate(2))
    g_g = jnp.tanh(gate(3))
    c_next = f_g * c + i_g * g_g
    h_next = o_g * jnp.tanh(c_next)
    return h_next, c_next


# ----------------------------------- main ------------------------------------
if __name__ == "__main__":
    # QConvLSTMCell(input_dim=4, hidden_dim=8, kernel_size=(3,3), bias=True)
    input_dim, hidden_dim = 4, 8
    B, H, W = 2, 16, 16
    KH = KW = 3                                    # padding = (1, 1), stride = 1

    # QuaternionConv(in=12, out=32, k=3) parameters, deterministic (module seeds randomly).
    r, i, j, k = quaternion_init_np((input_dim + hidden_dim) // 4, hidden_dim,
                                    (KH, KW), seed=0, criterion="glorot")
    w_quat = make_quaternion_weight(r, i, j, k).astype(np.float32)   # (32, 12, 3, 3)
    bias = np.zeros((4 * hidden_dim,), np.float32)                   # bias.data.zero_()

    w_gemm, b_gemm = build_qconvlstm_gemm_params(w_quat, bias, input_dim, hidden_dim,
                                                 W, KH, KW)

    key = jax.random.PRNGKey(0)
    kx, kh0, kc0 = jax.random.split(key, 3)
    x = jax.random.normal(kx, (B, input_dim, H, W), dtype=jnp.float32)
    h0 = jax.random.normal(kh0, (B, hidden_dim, H, W), dtype=jnp.float32)
    c0 = jax.random.normal(kc0, (B, hidden_dim, H, W), dtype=jnp.float32)

    fwd = jax.jit(functools.partial(qconvlstm_cell_nchw, kernel_hw=(KH, KW)))
    h1, c1 = fwd(x, h0, c0, jnp.asarray(w_gemm), jnp.asarray(b_gemm))
    h1, c1 = jax.block_until_ready((h1, c1))

    h_ref, c_ref = qconvlstm_cell_reference(x, h0, c0, jnp.asarray(w_quat),
                                            jnp.asarray(bias), hidden_dim, (KH, KW))

    assert h1.shape == (B, hidden_dim, H, W) and c1.shape == (B, hidden_dim, H, W)
    assert jnp.allclose(h1, h_ref, atol=2e-4, rtol=2e-4), float(jnp.max(jnp.abs(h1 - h_ref)))
    assert jnp.allclose(c1, c_ref, atol=2e-4, rtol=2e-4), float(jnp.max(jnp.abs(c1 - c_ref)))
    print("KERNEL_OK")
</pallas_src>

<mosaic_0001>
module attributes {stable_mosaic.version = 11 : i64} {
  func.func @kernel(%arg0: i32, %arg1: memref<2x16x192xf32, #tpu.memory_space<vmem>>, %arg2: memref<32x128xf32, #tpu.memory_space<vmem>>, %arg3: memref<3x192x512xf32, #tpu.memory_space<vmem>>, %arg4: memref<1x512xf32, #tpu.memory_space<vmem>>, %arg5: memref<32x128xf32, #tpu.memory_space<vmem>>, %arg6: memref<32x128xf32, #tpu.memory_space<vmem>>, %arg7: memref<2x18x192xf32, #tpu.memory_space<vmem>>) attributes {dimension_semantics = [#tpu.dimension_semantics<arbitrary>], iteration_bounds = array<i64: 1>, scalar_prefetch = 0 : i64, scratch_operands = 1 : i64, tpu.core_type = #tpu.core_type<tc>, window_params = [{pipeline_mode = #tpu.pipeline_mode<synchronous>, transform_indices = @transform_0, window_bounds = array<i64: 2, 16, 192>}, {pipeline_mode = #tpu.pipeline_mode<synchronous>, transform_indices = @transform_1, window_bounds = array<i64: 32, 128>}, {pipeline_mode = #tpu.pipeline_mode<synchronous>, transform_indices = @transform_2, window_bounds = array<i64: 3, 192, 512>}, {pipeline_mode = #tpu.pipeline_mode<synchronous>, transform_indices = @transform_3, window_bounds = array<i64: 1, 512>}, {pipeline_mode = #tpu.pipeline_mode<synchronous>, transform_indices = @transform_4, window_bounds = array<i64: 32, 128>}, {pipeline_mode = #tpu.pipeline_mode<synchronous>, transform_indices = @transform_5, window_bounds = array<i64: 32, 128>}]} {
    %cst = arith.constant 0.000000e+00 : f32
    %0 = vector.broadcast %cst : f32 to vector<2x18x192xf32>
    %c0 = arith.constant 0 : index
    %c0_0 = arith.constant 0 : index
    %c0_1 = arith.constant 0 : index
    %1 = vector.load %arg7[%c0, %c0_0, %c0_1] : memref<2x18x192xf32, #tpu.memory_space<vmem>>, vector<2x18x192xf32>
    tpu.vector_store %arg7[%c0, %c0_0, %c0_1], %0 {strides = array<i32>} : memref<2x18x192xf32, #tpu.memory_space<vmem>>, vector<2x18x192xf32>,
    %c0_2 = arith.constant 0 : index
    %c0_3 = arith.constant 0 : index
    %c0_4 = arith.constant 0 : index
    %2 = vector.load %arg1[%c0_2, %c0_3, %c0_4] : memref<2x16x192xf32, #tpu.memory_space<vmem>>, vector<2x16x192xf32>
    %c0_5 = arith.constant 0 : index
    %c1 = arith.constant 1 : index
    %c0_6 = arith.constant 0 : index
    %3 = vector.load %arg7[%c0_5, %c1, %c0_6] : memref<2x18x192xf32, #tpu.memory_space<vmem>>, vector<2x16x192xf32>
    tpu.vector_store %arg7[%c0_5, %c1, %c0_6], %2 {strides = array<i32>} : memref<2x18x192xf32, #tpu.memory_space<vmem>>, vector<2x16x192xf32>,
    %c0_7 = arith.constant 0 : index
    %c0_8 = arith.constant 0 : index
    %c0_9 = arith.constant 0 : index
    %4 = vector.load %arg7[%c0_7, %c0_8, %c0_9] : memref<2x18x192xf32, #tpu.memory_space<vmem>>, vector<2x18x192xf32>
    %c0_10 = arith.constant 0 : index
    %c0_11 = arith.constant 0 : index
    %5 = vector.load %arg4[%c0_10, %c0_11] : memref<1x512xf32, #tpu.memory_space<vmem>>, vector<1x512xf32>
    %6 = vector.shape_cast %5 : vector<1x512xf32> to vector<1x512xf32>
    %7 = vector.broadcast %6 : vector<1x512xf32> to vector<32x512xf32>
    %8 = vector.extract_strided_slice %4 {offsets = [0, 0, 0], sizes = [2, 16, 192], strides = [1, 1, 1]} : vector<2x18x192xf32> to vector<2x16x192xf32>
    %9 = vector.shape_cast %8 : vector<2x16x192xf32> to vector<32x192xf32>
    %c0_12 = arith.constant 0 : index
    %c0_13 = arith.constant 0 : index
    %c0_14 = arith.constant 0 : index
    %10 = vector.load %arg3[%c0_12, %c0_13, %c0_14] : memref<3x192x512xf32, #tpu.memory_space<vmem>>, vector<1x192x512xf32>
    %11 = vector.shape_cast %10 : vector<1x192x512xf32> to vector<192x512xf32>
    %cst_15 = arith.constant dense<0.000000e+00> : vector<32x512xf32>
    %12 = tpu.matmul %9, %11, %cst_15 {dimension_numbers = #tpu.dot_dimension_numbers<[1], [0], [0], [1], [0, 0, 1, 1], [], []>} : vector<32x192xf32>, vector<192x512xf32>, vector<32x512xf32> -> vector<32x512xf32>
    %13 = arith.addf %7, %12 : vector<32x512xf32>
    %14 = vector.extract_strided_slice %4 {offsets = [0, 1, 0], sizes = [2, 16, 192], strides = [1, 1, 1]} : vector<2x18x192xf32> to vector<2x16x192xf32>
    %15 = vector.shape_cast %14 : vector<2x16x192xf32> to vector<32x192xf32>
    %c1_16 = arith.constant 1 : index
    %c0_17 = arith.constant 0 : index
    %c0_18 = arith.constant 0 : index
    %16 = vector.load %arg3[%c1_16, %c0_17, %c0_18] : memref<3x192x512xf32, #tpu.memory_space<vmem>>, vector<1x192x512xf32>
    %17 = vector.shape_cast %16 : vector<1x192x512xf32> to vector<192x512xf32>
    %cst_19 = arith.constant dense<0.000000e+00> : vector<32x512xf32>
    %18 = tpu.matmul %15, %17, %cst_19 {dimension_numbers = #tpu.dot_dimension_numbers<[1], [0], [0], [1], [0, 0, 1, 1], [], []>} : vector<32x192xf32>, vector<192x512xf32>, vector<32x512xf32> -> vector<32x512xf32>
    %19 = arith.addf %13, %18 : vector<32x512xf32>
    %20 = vector.extract_strided_slice %4 {offsets = [0, 2, 0], sizes = [2, 16, 192], strides = [1, 1, 1]} : vector<2x18x192xf32> to vector<2x16x192xf32>
    %21 = vector.shape_cast %20 : vector<2x16x192xf32> to vector<32x192xf32>
    %c2 = arith.constant 2 : index
    %c0_20 = arith.constant 0 : index
    %c0_21 = arith.constant 0 : index
    %22 = vector.load %arg3[%c2, %c0_20, %c0_21] : memref<3x192x512xf32, #tpu.memory_space<vmem>>, vector<1x192x512xf32>
    %23 = vector.shape_cast %22 : vector<1x192x512xf32> to vector<192x512xf32>
    %cst_22 = arith.constant dense<0.000000e+00> : vector<32x512xf32>
    %24 = tpu.matmul %21, %23, %cst_22 {dimension_numbers = #tpu.dot_dimension_numbers<[1], [0], [0], [1], [0, 0, 1, 1], [], []>} : vector<32x192xf32>, vector<192x512xf32>, vector<32x512xf32> -> vector<32x512xf32>
    %25 = arith.addf %19, %24 : vector<32x512xf32>
    %26 = vector.extract_strided_slice %25 {offsets = [0, 0], sizes = [32, 128], strides = [1, 1]} : vector<32x512xf32> to vector<32x128xf32>
    %cst_23 = arith.constant 0.000000e+00 : f32
    %27 = vector.broadcast %cst_23 : f32 to vector<32x128xf32>
    %28 = arith.subf %27, %26 : vector<32x128xf32>
    %29 = math.exp %28 : vector<32x128xf32>
    %cst_24 = arith.constant 1.000000e+00 : f32
    %30 = vector.broadcast %cst_24 : f32 to vector<32x128xf32>
    %31 = arith.addf %30, %29 : vector<32x128xf32>
    %cst_25 = arith.constant 1.000000e+00 : f32
    %32 = vector.broadcast %cst_25 : f32 to vector<32x128xf32>
    %33 = arith.divf %32, %31 : vector<32x128xf32>
    %34 = vector.extract_strided_slice %25 {offsets = [0, 128], sizes = [32, 128], strides = [1, 1]} : vector<32x512xf32> to vector<32x128xf32>
    %cst_26 = arith.constant 0.000000e+00 : f32
    %35 = vector.broadcast %cst_26 : f32 to vector<32x128xf32>
    %36 = arith.subf %35, %34 : vector<32x128xf32>
    %37 = math.exp %36 : vector<32x128xf32>
    %cst_27 = arith.constant 1.000000e+00 : f32
    %38 = vector.broadcast %cst_27 : f32 to vector<32x128xf32>
    %39 = arith.addf %38, %37 : vector<32x128xf32>
    %cst_28 = arith.constant 1.000000e+00 : f32
    %40 = vector.broadcast %cst_28 : f32 to vector<32x128xf32>
    %41 = arith.divf %40, %39 : vector<32x128xf32>
    %42 = vector.extract_strided_slice %25 {offsets = [0, 256], sizes = [32, 128], strides = [1, 1]} : vector<32x512xf32> to vector<32x128xf32>
    %cst_29 = arith.constant 0.000000e+00 : f32
    %43 = vector.broadcast %cst_29 : f32 to vector<32x128xf32>
    %44 = arith.subf %43, %42 : vector<32x128xf32>
    %45 = math.exp %44 : vector<32x128xf32>
    %cst_30 = arith.constant 1.000000e+00 : f32
    %46 = vector.broadcast %cst_30 : f32 to vector<32x128xf32>
    %47 = arith.addf %46, %45 : vector<32x128xf32>
    %cst_31 = arith.constant 1.000000e+00 : f32
    %48 = vector.broadcast %cst_31 : f32 to vector<32x128xf32>
    %49 = arith.divf %48, %47 : vector<32x128xf32>
    %50 = vector.extract_strided_slice %25 {offsets = [0, 384], sizes = [32, 128], strides = [1, 1]} : vector<32x512xf32> to vector<32x128xf32>
    %51 = math.tanh %50 : vector<32x128xf32>
    %c0_32 = arith.constant 0 : index
    %c0_33 = arith.constant 0 : index
    %52 = vector.load %arg2[%c0_32, %c0_33] : memref<32x128xf32, #tpu.memory_space<vmem>>, vector<32x128xf32>
    %53 = arith.mulf %41, %52 : vector<32x128xf32>
    %54 = arith.mulf %33, %51 : vector<32x128xf32>
    %55 = arith.addf %53, %54 : vector<32x128xf32>
    %56 = math.tanh %55 : vector<32x128xf32>
    %57 = arith.mulf %49, %56 : vector<32x128xf32>
    %c0_34 = arith.constant 0 : index
    %c0_35 = arith.constant 0 : index
    %58 = vector.load %arg5[%c0_34, %c0_35] : memref<32x128xf32, #tpu.memory_space<vmem>>, vector<32x128xf32>
    tpu.vector_store %arg5[%c0_34, %c0_35], %57 {strides = array<i32>} : memref<32x128xf32, #tpu.memory_space<vmem>>, vector<32x128xf32>,
    %c0_36 = arith.constant 0 : index
    %c0_37 = arith.constant 0 : index
    %59 = vector.load %arg6[%c0_36, %c0_37] : memref<32x128xf32, #tpu.memory_space<vmem>>, vector<32x128xf32>
    tpu.vector_store %arg6[%c0_36, %c0_37], %55 {strides = array<i32>} : memref<32x128xf32, #tpu.memory_space<vmem>>, vector<32x128xf32>,
    return
  }
  func.func @transform_0(%arg0: i32) -> (i32, i32, i32) {
    %c0_i32 = arith.constant 0 : i32
    %c0_i32_0 = arith.constant 0 : i32
    %c0_i32_1 = arith.constant 0 : i32
    %c0_i32_2 = arith.constant 0 : i32
    return %c0_i32, %c0_i32_0, %c0_i32_1 : i32, i32, i32
  }
  func.func @transform_1(%arg0: i32) -> (i32, i32) {
    %c0_i32 = arith.constant 0 : i32
    %c0_i32_0 = arith.constant 0 : i32
    %c0_i32_1 = arith.constant 0 : i32
    return %c0_i32, %c0_i32_0 : i32, i32
  }
  func.func @transform_2(%arg0: i32) -> (i32, i32, i32) {
    %c0_i32 = arith.constant 0 : i32
    %c0_i32_0 = arith.constant 0 : i32
    %c0_i32_1 = arith.constant 0 : i32
    %c0_i32_2 = arith.constant 0 : i32
    return %c0_i32, %c0_i32_0, %c0_i32_1 : i32, i32, i32
  }
  func.func @transform_3(%arg0: i32) -> (i32, i32) {
    %c0_i32 = arith.constant 0 : i32
    %c0_i32_0 = arith.constant 0 : i32
    %c0_i32_1 = arith.constant 0 : i32
    return %c0_i32, %c0_i32_0 : i32, i32
  }
  func.func @transform_4(%arg0: i32) -> (i32, i32) {
    %c0_i32 = arith.constant 0 : i32
    %c0_i32_0 = arith.constant 0 : i32
    %c0_i32_1 = arith.constant 0 : i32
    return %c0_i32, %c0_i32_0 : i32, i32
  }
  func.func @transform_5(%arg0: i32) -> (i32, i32) {
    %c0_i32 = arith.constant 0 : i32
    %c0_i32_0 = arith.constant 0 : i32
    %c0_i32_1 = arith.constant 0 : i32
    return %c0_i32, %c0_i32_0 : i32, i32
  }
}

</mosaic_0001>

<bundles_post_ra>
// kernel: qconvlstm_cell_nchw.1
= control target key start
LH: loop header
LB: loop body
LE: loop exit
PB: predicated region body
PF: predicated region fallthrough
CT: control target
= control target key end

     0   :  { %vm20_vm0 = vcmask 523264   ;;  %v1831_v3 = vmov 0.0   ;;  %vm75_vm1 = vcmask 523265   ;;  %vm49_vm2 = vcmask 1040384   ;;  %s3525_s2 = inlined_call_operand.vmem [shape: f32[3,192,512], index: 2, kind: input, shape index: {}]   ;;  %s3526_s0 = inlined_call_operand.vmem [shape: f32[2,16,192], index: 0, kind: input, shape index: {}]   ;;  %s3527_s3 = inlined_call_operand.vmem [shape: f32[1,512], index: 3, kind: input, shape index: {}]   ;;  %s3528_s1 = inlined_call_operand.vmem [shape: f32[32,128], index: 1, kind: input, shape index: {}]   ;;  %s3529_s5 = inlined_call_operand.vmem [shape: f32[32,128], index: 5, kind: output, shape index: {1}]   ;;  %s3530_s4 = inlined_call_operand.vmem [shape: f32[32,128], index: 4, kind: output, shape index: {0}]  }
   0x1   :  { %v170_v0 = vld [vmem:[%s3525_s2 + $0x1e0] sm:$0xff]  ;;  %v171_v1 = vld [vmem:[%s3525_s2 + $0x1e8] sm:$0xff]  ;;  %21 = vst.msk [vmem:[#allocation2 + $0x8] sm:$0xff] %vm20_vm0, %v1831_v3  ;;  %v204_v34 = vld [vmem:[%s3525_s2 + $0x2f0] sm:$0xff]  ;;  %vm25_vm3 = vcmask 517120   ;;  %vm80_vm4 = vcmask 516096  }
   0x2   :  { %v203_v2 = vld [vmem:[%s3525_s2 + $0x2e8] sm:$0xff]  ;;  %218 = vmatpush.msra.mxu0 %v170_v0  ;;  %276 = vmatpush.msra.mxu2 %v171_v1  ;;  %v166_v4 = vld [vmem:[%s3525_s2 + $0x1c0] sm:$0xff]  ;;  %19 = vst [vmem:[#allocation2] sm:$0xff] %v1831_v3  ;;  %v1980_v36 = vld [vmem:[%s3526_s0 + $0x18] sm:$0xff]  ;;  %vm474_vm5 = vcmask 1046528   ;;  %vm852_vm6 = vcmask 1045504  }
   0x3   :  { %v167_v5 = vld [vmem:[%s3525_s2 + $0x1c8] sm:$0xff]  ;;  %313 = vmatpush.msra.mxu3 %v203_v2  ;;  %v162_v7 = vld [vmem:[%s3525_s2 + $0x1a0] sm:$0xff]  ;;  %23 = vst.msk [vmem:[#allocation2 + $0x18] sm:$0xff] %vm20_vm0, %v1831_v3  ;;  %v54_v39 = vrot.slane %v1980_v36, 7  ;;  %v200_v41 = vld [vmem:[%s3525_s2 + $0x2d0] sm:$0xff] }
   0x4   :  { %v199_v6 = vld [vmem:[%s3525_s2 + $0x2c8] sm:$0xff]  ;;  %219 = vmatpush.msra.mxu0 %v166_v4  ;;  %277 = vmatpush.msra.mxu2 %v167_v5  ;;  %v202_v10 = vld [vmem:[%s3525_s2 + $0x2e0] sm:$0xff]  ;;  %24 = vst [vmem:[#allocation2 + $0x20] sm:$0x3] %v1831_v3  ;;  %v172_v47 = vld [vmem:[%s3525_s2 + $0x1f0] sm:$0xff] }
   0x5   :  { %v163_v8 = vld [vmem:[%s3525_s2 + $0x1a8] sm:$0xff]  ;;  %314 = vmatpush.msra.mxu3 %v199_v6  ;;  %v158_v11 = vld [vmem:[%s3525_s2 + $0x180] sm:$0xff]  ;;  %255 = vmatpush.msra.mxu1 %v202_v10  ;;  %27 = vst [vmem:[#allocation2 + $0x30] sm:$0xff] %v1831_v3  ;;  %v196_v49 = vld [vmem:[%s3525_s2 + $0x2b0] sm:$0xff] }
   0x6   :  { %v195_v9 = vld [vmem:[%s3525_s2 + $0x2a8] sm:$0xff]  ;;  %v198_v13 = vld [vmem:[%s3525_s2 + $0x2c0] sm:$0xff]  ;;  %220 = vmatpush.msra.mxu0 %v162_v7  ;;  %278 = vmatpush.msra.mxu2 %v163_v8  ;;  %28 = vst.msk [vmem:[#allocation2 + $0x38] sm:$0xff] %vm20_vm0, %v1831_v3  ;;  %v168_v53 = vld [vmem:[%s3525_s2 + $0x1d0] sm:$0xff] }
   0x7   :  { %v159_v12 = vld [vmem:[%s3525_s2 + $0x188] sm:$0xff]  ;;  %315 = vmatpush.msra.mxu3 %v195_v9  ;;  %v154_v15 = vld [vmem:[%s3525_s2 + $0x160] sm:$0xff]  ;;  %256 = vmatpush.msra.mxu1 %v198_v13  ;;  %30 = vst.msk [vmem:[#allocation2 + $0x48] sm:$0xff] %vm20_vm0, %v1831_v3  ;;  %v192_v58 = vld [vmem:[%s3525_s2 + $0x290] sm:$0xff] }
   0x8   :  { %v191_v14 = vld [vmem:[%s3525_s2 + $0x288] sm:$0xff]  ;;  %v194_v17 = vld [vmem:[%s3525_s2 + $0x2a0] sm:$0xff]  ;;  %221 = vmatpush.msra.mxu0 %v158_v11  ;;  %279 = vmatpush.msra.mxu2 %v159_v12  ;;  %31 = vst [vmem:[#allocation2 + $0x50] sm:$0x3] %v1831_v3  ;;  %v164_v59 = vld [vmem:[%s3525_s2 + $0x1b0] sm:$0xff] }
   0x9   :  { %v155_v16 = vld [vmem:[%s3525_s2 + $0x168] sm:$0xff]  ;;  %v190_v19 = vld [vmem:[%s3525_s2 + $0x280] sm:$0xff]  ;;  %316 = vmatpush.msra.mxu3 %v191_v14  ;;  %257 = vmatpush.msra.mxu1 %v194_v17  ;;  %v35_v60 = vld [vmem:[%s3526_s0 + $0x10] sm:$0xff]  ;;  %26 = vst.msk [vmem:[#allocation2 + $0x28] sm:$0x3] %vm25_vm3, %v1831_v3 }
   0xa   :  { %v187_v18 = vld [vmem:[%s3525_s2 + $0x268] sm:$0xff]  ;;  %v150_v20 = vld [vmem:[%s3525_s2 + $0x140] sm:$0xff]  ;;  %222 = vmatpush.msra.mxu0 %v154_v15  ;;  %280 = vmatpush.msra.mxu2 %v155_v16  ;;  %v2053_v61 = vld [vmem:[%s3526_s0 + $0x38] sm:$0xff]  ;;  %v52_v0 = vrot.slane %v35_v60, 7  ;;  %81 = vst.msk [vmem:[#allocation2 + $0x28] sm:$0x1] %vm80_vm4, %v54_v39 }
   0xb   :  { %v151_v21 = vld [vmem:[%s3525_s2 + $0x148] sm:$0xff]  ;;  %v186_v23 = vld [vmem:[%s3525_s2 + $0x260] sm:$0xff]  ;;  %317 = vmatpush.msra.mxu3 %v187_v18  ;;  %258 = vmatpush.msra.mxu1 %v190_v19  ;;  %v188_v63 = vld [vmem:[%s3525_s2 + $0x270] sm:$0xff]  ;;  %v60_v1 = vrot.slane %v2053_v61, 7  ;;  %32 = vst.msk [vmem:[#allocation2 + $0x58] sm:$0x3] %vm25_vm3, %v1831_v3 }
   0xc   :  { %v183_v22 = vld [vmem:[%s3525_s2 + $0x248] sm:$0xff]  ;;  %v146_v25 = vld [vmem:[%s3525_s2 + $0x120] sm:$0xff]  ;;  %223 = vmatpush.msra.mxu0 %v150_v20  ;;  %281 = vmatpush.msra.mxu2 %v151_v21  ;;  %v160_v5 = vld [vmem:[%s3525_s2 + $0x190] sm:$0xff]  ;;  %79 = vst [vmem:[#allocation2 + $0x20] sm:$0x1] %v52_v0 }
   0xd   :  { %v34_v24 = vld [vmem:[%s3526_s0 + $0x8] sm:$0xff]  ;;  %v182_v29 = vld [vmem:[%s3525_s2 + $0x240] sm:$0xff]  ;;  %318 = vmatpush.msra.mxu3 %v183_v22  ;;  %259 = vmatpush.msra.mxu1 %v186_v23  ;;  %v156_v10 = vld [vmem:[%s3525_s2 + $0x170] sm:$0xff]  ;;  %87 = vst.msk [vmem:[#allocation2 + $0x58] sm:$0x1] %vm80_vm4, %v60_v1 }
   0xe   :  { %v147_v26 = vld [vmem:[%s3525_s2 + $0x128] sm:$0xff]  ;;  %v51_v27 = vrot.slane %v34_v24, 7  ;;  %v142_v30 = vld [vmem:[%s3525_s2 + $0x100] sm:$0xff]  ;;  %224 = vmatpush.msra.mxu0 %v146_v25  ;;  %v152_v16 = vld [vmem:[%s3525_s2 + $0x150] sm:$0xff] }
   0xf   :  { %v179_v28 = vld [vmem:[%s3525_s2 + $0x228] sm:$0xff]  ;;  %282 = vmatpush.msra.mxu2 %v147_v26  ;;  %v178_v33 = vld [vmem:[%s3525_s2 + $0x220] sm:$0xff]  ;;  %260 = vmatpush.msra.mxu1 %v182_v29  ;;  %v184_v17 = vld [vmem:[%s3525_s2 + $0x250] sm:$0xff] }
  0x10   :  { %v143_v31 = vld [vmem:[%s3525_s2 + $0x108] sm:$0xff]  ;;  %76 = vst.msk [vmem:[#allocation2 + $0x8] sm:$0xfe] %vm75_vm1, %v51_v27  ;;  %319 = vmatpush.msra.mxu3 %v179_v28  ;;  %v138_v35 = vld [vmem:[%s3525_s2 + $0xe0] sm:$0xff]  ;;  %225 = vmatpush.msra.mxu0 %v142_v30  ;;  %v55_v43 = vsel %vm49_vm2, %v51_v27, %v54_v39  ;;  %v205_v18 = vld [vmem:[%s3525_s2 + $0x2f8] sm:$0xff] }
  0x11   :  { %v175_v32 = vld [vmem:[%s3525_s2 + $0x208] sm:$0xff]  ;;  %283 = vmatpush.msra.mxu2 %v143_v31  ;;  %v174_v38 = vld [vmem:[%s3525_s2 + $0x200] sm:$0xff]  ;;  %261 = vmatpush.msra.mxu1 %v178_v33  ;;  %78 = vst.msk [vmem:[#allocation2 + $0x18] sm:$0xff] %vm20_vm0, %v55_v43  ;;  %v148_v19 = vld [vmem:[%s3525_s2 + $0x130] sm:$0xff] }
  0x12   :  { %v139_v37 = vld [vmem:[%s3525_s2 + $0xe8] sm:$0xff]  ;;  %320 = vmatpush.msra.mxu3 %v175_v32  ;;  %v134_v40 = vld [vmem:[%s3525_s2 + $0xc0] sm:$0xff]  ;;  %226 = vmatpush.msra.mxu0 %v138_v35  ;;  %v173_v20 = vld [vmem:[%s3525_s2 + $0x1f8] sm:$0xff] }
  0x13   :  { %v135_v42 = vld [vmem:[%s3525_s2 + $0xc8] sm:$0xff]  ;;  %284 = vmatpush.msra.mxu2 %v139_v37  ;;  %v130_v44 = vld [vmem:[%s3525_s2 + $0xa0] sm:$0xff]  ;;  %262 = vmatpush.msra.mxu1 %v174_v38  ;;  %v201_v22 = vld [vmem:[%s3525_s2 + $0x2d8] sm:$0xff] }
  0x14   :  { %371 = vmatpush.msrb.mxu3 %v204_v34  ;;  %v131_v45 = vld [vmem:[%s3525_s2 + $0xa8] sm:$0xff]  ;;  %227 = vmatpush.msra.mxu0 %v134_v40  ;;  %v126_v48 = vld [vmem:[%s3525_s2 + $0x80] sm:$0xff]  ;;  %v39_v23 = vld [vmem:[%s3526_s0 + $0x30] sm:$0xff] }
  0x15   :  { %285 = vmatpush.msra.mxu2 %v135_v42  ;;  %v33_v50 = vld [vmem:[%s3526_s0] sm:$0xff]  ;;  %v38_v51 = vld [vmem:[%s3526_s0 + $0x28] sm:$0xff]  ;;  %334 = vmatpush.msrb.mxu1 %v172_v47  ;;  %v144_v24 = vld [vmem:[%s3525_s2 + $0x110] sm:$0xff]  ;;  %v58_v26 = vrot.slane %v39_v23, 7 }
  0x16   :  { %372 = vmatpush.msrb.mxu3 %v200_v41  ;;  %228 = vmatpush.msra.mxu0 %v130_v44  ;;  %v127_v52 = vld [vmem:[%s3525_s2 + $0x88] sm:$0xff]  ;;  %v50_v54 = vrot.slane %v33_v50, 7  ;;  %v57_v55 = vrot.slane %v38_v51, 7  ;;  %v122_v56 = vld [vmem:[%s3525_s2 + $0x60] sm:$0xff]  ;;  %v180_v25 = vld [vmem:[%s3525_s2 + $0x230] sm:$0xff] }
  0x17   :  { %v2008_v46 = vld [vmem:[#allocation2 + $0x8] sm:$0xff]  ;;  %286 = vmatpush.msra.mxu2 %v131_v45  ;;  %335 = vmatpush.msrb.mxu1 %v168_v53  ;;  %v118_v62 = vld [vmem:[%s3525_s2 + $0x40] sm:$0xff]  ;;  %v169_v27 = vld [vmem:[%s3525_s2 + $0x1d8] sm:$0xff]  ;;  %86 = vst [vmem:[#allocation2 + $0x50] sm:$0x1] %v58_v26 }
  0x18   :  { %1506 = vmatmul.msk.f32.vlgmr.msra.gmra.mxu3 %vm20_vm0, %v2008_v46  ;;  %1502 = vmatmul.msk.f32.vlgmr.msra.gmra.mxu1 %vm20_vm0, %v2008_v46  ;;  %v123_v57 = vld [vmem:[%s3525_s2 + $0x68] sm:$0xff]  ;;  %74 = vst [vmem:[#allocation2] sm:$0xfe] %v50_v54  ;;  %v2063_v2 = vld [vmem:[#allocation2 + $0x18] sm:$0xff]  ;;  %v114_v6 = vld [vmem:[%s3525_s2 + $0x20] sm:$0xff]  ;;  %v2075_v7 = vsel %vm49_vm2, %v50_v54, %v52_v0  ;;  %v61_v8 = vsel %vm49_vm2, %v57_v55, %v60_v1 }
  0x19   :  { %229 = vmatpush.msra.mxu0 %v126_v48  ;;  %373 = vmatpush.msrb.mxu3 %v196_v49  ;;  %83 = vst.msk [vmem:[#allocation2 + $0x38] sm:$0xfe] %vm75_vm1, %v57_v55  ;;  %v119_v4 = vld [vmem:[%s3525_s2 + $0x48] sm:$0xff]  ;;  %v110_v11 = vld [vmem:[%s3525_s2] sm:$0xff]  ;;  %v140_v28 = vld [vmem:[%s3525_s2 + $0xf0] sm:$0xff] }
  0x1a   :  { %287 = vmatpush.msra.mxu2 %v127_v52  ;;  %336 = vmatpush.msrb.mxu1 %v164_v59  ;;  %v115_v9 = vld [vmem:[%s3525_s2 + $0x28] sm:$0xff]  ;;  %85 = vst.msk [vmem:[#allocation2 + $0x48] sm:$0xff] %vm20_vm0, %v61_v8  ;;  %v37_v12 = vld [vmem:[%s3526_s0 + $0x20] sm:$0xff]  ;;  %v176_v29 = vld [vmem:[%s3525_s2 + $0x210] sm:$0xff] }
  0x1b   :  { %230 = vmatpush.msra.mxu0 %v122_v56  ;;  %374 = vmatpush.msrb.mxu3 %v192_v58  ;;  %v111_v13 = vld [vmem:[%s3525_s2 + $0x8] sm:$0xff]  ;;  %v56_v14 = vrot.slane %v37_v12, 7  ;;  %v197_v31 = vld [vmem:[%s3525_s2 + $0x2b8] sm:$0xff]  ;;  %v136_v32 = vld [vmem:[%s3525_s2 + $0xd0] sm:$0xff] }
  0x1c   :  { %288 = vmatpush.msra.mxu2 %v123_v57  ;;  %337 = vmatpush.msrb.mxu1 %v160_v5  ;;  %v165_v33 = vld [vmem:[%s3525_s2 + $0x1b8] sm:$0xff]  ;;  %v132_v35 = vld [vmem:[%s3525_s2 + $0xb0] sm:$0xff]  ;;  %v1610_v37 = vld [vmem:[%s3525_s2 + $0x5e0] sm:$0xff] }
  0x1d   :  { %231 = vmatpush.msra.mxu0 %v118_v62  ;;  %375 = vmatpush.msrb.mxu3 %v188_v63  ;;  %82 = vst [vmem:[#allocation2 + $0x30] sm:$0xfe] %v56_v14  ;;  %v2145_v30 = vsel %vm49_vm2, %v56_v14, %v58_v26  ;;  %v193_v34 = vld [vmem:[%s3525_s2 + $0x298] sm:$0xff]  ;;  %v128_v41 = vld [vmem:[%s3525_s2 + $0x90] sm:$0xff]  ;;  %v1606_v45 = vld [vmem:[%s3525_s2 + $0x5c0] sm:$0xff] }
  0x1e   :  { %289 = vmatpush.msra.mxu2 %v119_v4  ;;  %338 = vmatpush.msrb.mxu1 %v156_v10  ;;  %v161_v40 = vld [vmem:[%s3525_s2 + $0x198] sm:$0xff]  ;;  %v124_v44 = vld [vmem:[%s3525_s2 + $0x70] sm:$0xff]  ;;  %v1602_v51 = vld [vmem:[%s3525_s2 + $0x5a0] sm:$0xff] }
  0x1f   :  { %232 = vmatpush.msra.mxu0 %v114_v6  ;;  %v2100_v15 = vld [vmem:[#allocation2] sm:$0xff]  ;;  %376 = vmatpush.msrb.mxu3 %v184_v17  ;;  %v189_v42 = vld [vmem:[%s3525_s2 + $0x278] sm:$0xff]  ;;  %v120_v49 = vld [vmem:[%s3525_s2 + $0x50] sm:$0xff] }
  0x20   :  { %1507 = vmatmul.msk.f32.gmra.mxu3 %vm20_vm0, %v2063_v2  ;;  %290 = vmatpush.msra.mxu2 %v115_v9  ;;  %v2119_v21 = vld [vmem:[#allocation2 + $0x38] sm:$0xff]  ;;  %v116_v52 = vld [vmem:[%s3525_s2 + $0x30] sm:$0xff]  ;;  %v1598_v56 = vld [vmem:[%s3525_s2 + $0x580] sm:$0xff] }
  0x21   :  { %1503 = vmatmul.msk.f32.gmra.mxu1 %vm20_vm0, %v2063_v2  ;;  %233 = vmatpush.msra.mxu0 %v110_v11  ;;  %v2169_v38 = vld [vmem:[#allocation2 + $0x48] sm:$0xff]  ;;  %v157_v43 = vld [vmem:[%s3525_s2 + $0x178] sm:$0xff]  ;;  %v112_v55 = vld [vmem:[%s3525_s2 + $0x10] sm:$0xff] }
  0x22   :  { %291 = vmatpush.msra.mxu2 %v111_v13  ;;  %234 = vmatmul.f32.vlgmr.msra.gmra.mxu0 %v2100_v15  ;;  %v185_v48 = vld [vmem:[%s3525_s2 + $0x258] sm:$0xff]  ;;  %v1578_v36 = vld [vmem:[%s3525_s2 + $0x4e0] sm:$0xff]  ;;  %v1611_v62 = vld [vmem:[%s3525_s2 + $0x5e8] sm:$0xff] }
  0x23   :  { %292 = vmatmul.f32.vlgmr.msra.gmra.mxu2 %v2100_v15  ;;  %339 = vmatpush.msrb.mxu1 %v152_v16  ;;  %v153_v50 = vld [vmem:[%s3525_s2 + $0x158] sm:$0xff]  ;;  %v1594_v58 = vld [vmem:[%s3525_s2 + $0x560] sm:$0xff]  ;;  %v1607_v5 = vld [vmem:[%s3525_s2 + $0x5c8] sm:$0xff] }
  0x24   :  { %429 = vmatpush.msrb.mxu2 %v205_v18  ;;  %392 = vmatpush.msrb.mxu0 %v173_v20  ;;  %v2191_v47 = vld [vmem:[#allocation2 + $0x30] sm:$0xff]  ;;  %v181_v53 = vld [vmem:[%s3525_s2 + $0x238] sm:$0xff]  ;;  %v1574_v59 = vld [vmem:[%s3525_s2 + $0x4c0] sm:$0xff] }
  0x25   :  { %340 = vmatpush.msrb.mxu1 %v148_v19  ;;  %377 = vmatpush.msrb.mxu3 %v180_v25  ;;  %v149_v54 = vld [vmem:[%s3525_s2 + $0x138] sm:$0xff]  ;;  %v1590_v61 = vld [vmem:[%s3525_s2 + $0x540] sm:$0xff]  ;;  %v1603_v12 = vld [vmem:[%s3525_s2 + $0x5a8] sm:$0xff] }
  0x26   :  { %430 = vmatpush.msrb.mxu2 %v201_v22  ;;  %393 = vmatpush.msrb.mxu0 %v169_v27  ;;  %v145_v57 = vld [vmem:[%s3525_s2 + $0x118] sm:$0xff]  ;;  %v1570_v63 = vld [vmem:[%s3525_s2 + $0x4a0] sm:$0xff]  ;;  %v1612_v14 = vld [vmem:[%s3525_s2 + $0x5f0] sm:$0xff] }
  0x27   :  { %341 = vmatpush.msrb.mxu1 %v144_v24  ;;  %378 = vmatpush.msrb.mxu3 %v176_v29  ;;  %v177_v3 = vld [vmem:[%s3525_s2 + $0x218] sm:$0xff]  ;;  %v1586_v1 = vld [vmem:[%s3525_s2 + $0x520] sm:$0xff]  ;;  %v1599_v18 = vld [vmem:[%s3525_s2 + $0x588] sm:$0xff] }
  0x28   :  { %1508 = vmatmul.msk.f32.gmra.mxu3 %vm20_vm0, %v2119_v21  ;;  %431 = vmatpush.msrb.mxu2 %v197_v31  ;;  %v141_v39 = vld [vmem:[%s3525_s2 + $0xf8] sm:$0xff]  ;;  %v1566_v4 = vld [vmem:[%s3525_s2 + $0x480] sm:$0xff]  ;;  %v1608_v20 = vld [vmem:[%s3525_s2 + $0x5d0] sm:$0xff] }
  0x29   :  { %1504 = vmatmul.msk.f32.gmra.mxu1 %vm20_vm0, %v2119_v21  ;;  %394 = vmatpush.msrb.mxu0 %v165_v33  ;;  %v137_v60 = vld [vmem:[%s3525_s2 + $0xd8] sm:$0xff]  ;;  %v1562_v8 = vld [vmem:[%s3525_s2 + $0x460] sm:$0xff]  ;;  %v1579_v24 = vld [vmem:[%s3525_s2 + $0x4e8] sm:$0xff] }
  0x2a   :  { %342 = vmatpush.msrb.mxu1 %v140_v28  ;;  %237 = vmatmul.f32.gmra.mxu0 %v2075_v7  ;;  %v133_v0 = vld [vmem:[%s3525_s2 + $0xb8] sm:$0xff]  ;;  %v1582_v9 = vld [vmem:[%s3525_s2 + $0x500] sm:$0xff]  ;;  %v1595_v26 = vld [vmem:[%s3525_s2 + $0x568] sm:$0xff] }
  0x2b   :  { %295 = vmatmul.f32.gmra.mxu2 %v2075_v7  ;;  %641 = vmatpush.msra.mxu3 %v1610_v37  ;;  %v129_v6 = vld [vmem:[%s3525_s2 + $0x98] sm:$0xff]  ;;  %v1558_v11 = vld [vmem:[%s3525_s2 + $0x440] sm:$0xff]  ;;  %v1575_v27 = vld [vmem:[%s3525_s2 + $0x4c8] sm:$0xff] }
  0x2c   :  { %343 = vmatpush.msrb.mxu1 %v136_v32  ;;  %432 = vmatpush.msrb.mxu2 %v193_v34  ;;  %v125_v10 = vld [vmem:[%s3525_s2 + $0x78] sm:$0xff]  ;;  %v1554_v16 = vld [vmem:[%s3525_s2 + $0x420] sm:$0xff]  ;;  %v1604_v28 = vld [vmem:[%s3525_s2 + $0x5b0] sm:$0xff] }
  0x2d   :  { %395 = vmatpush.msrb.mxu0 %v161_v40  ;;  %642 = vmatpush.msra.mxu3 %v1606_v45  ;;  %v121_v13 = vld [vmem:[%s3525_s2 + $0x58] sm:$0xff]  ;;  %v1550_v19 = vld [vmem:[%s3525_s2 + $0x400] sm:$0xff]  ;;  %v1571_v31 = vld [vmem:[%s3525_s2 + $0x4a8] sm:$0xff]  ;;  %v478_v40 = vrot.slane %v2008_v46, 1 }
  0x2e   :  { %344 = vmatpush.msrb.mxu1 %v132_v35  ;;  %433 = vmatpush.msrb.mxu2 %v189_v42  ;;  %v117_v17 = vld [vmem:[%s3525_s2 + $0x38] sm:$0xff]  ;;  %v1546_v23 = vld [vmem:[%s3525_s2 + $0x3e0] sm:$0xff]  ;;  %v1591_v32 = vld [vmem:[%s3525_s2 + $0x548] sm:$0xff] }
  0x2f   :  { %396 = vmatpush.msrb.mxu0 %v157_v43  ;;  %643 = vmatpush.msra.mxu3 %v1602_v51  ;;  %v113_v22 = vld [vmem:[%s3525_s2 + $0x18] sm:$0xff]  ;;  %v1542_v25 = vld [vmem:[%s3525_s2 + $0x3c0] sm:$0xff]  ;;  %v1600_v34 = vld [vmem:[%s3525_s2 + $0x590] sm:$0xff] }
  0x30   :  { %1509 = vmatmul.msk.f32.gmra.mxu3 %vm20_vm0, %v2169_v38  ;;  %345 = vmatpush.msrb.mxu1 %v128_v41  ;;  %v1538_v29 = vld [vmem:[%s3525_s2 + $0x3a0] sm:$0xff]  ;;  %v1567_v35 = vld [vmem:[%s3525_s2 + $0x488] sm:$0xff]  ;;  %v479_v41 = vrot.slane %v2063_v2, 1 }
  0x31   :  { %1505 = vmatmul.msk.f32.gmra.mxu1 %vm20_vm0, %v2169_v38  ;;  %434 = vmatpush.msrb.mxu2 %v185_v48  ;;  %v1534_v33 = vld [vmem:[%s3525_s2 + $0x380] sm:$0xff]  ;;  %v1563_v42 = vld [vmem:[%s3525_s2 + $0x468] sm:$0xff]  ;;  %v475_v48 = vrot.slane %v2100_v15, 1 }
  0x32   :  { %346 = vmatpush.msrb.mxu1 %v124_v44  ;;  %240 = vmatmul.f32.gmra.mxu0 %v2191_v47  ;;  %v1530_v37 = vld [vmem:[%s3525_s2 + $0x360] sm:$0xff]  ;;  %v1587_v44 = vld [vmem:[%s3525_s2 + $0x528] sm:$0xff]  ;;  %v2395_v51 = vsel %vm474_vm5, %v478_v40, %v479_v41  ;;  %v2532_v40 = vld [vmem:[#allocation2 + $0x50] sm:$0x3] }
  0x33   :  { %298 = vmatmul.f32.gmra.mxu2 %v2191_v47  ;;  %397 = vmatpush.msrb.mxu0 %v153_v50  ;;  %v1526_v43 = vld [vmem:[%s3525_s2 + $0x340] sm:$0xff]  ;;  %v1559_v45 = vld [vmem:[%s3525_s2 + $0x448] sm:$0xff]  ;;  %v1596_v50 = vld [vmem:[%s3525_s2 + $0x570] sm:$0xff] }
  0x34   :  { %347 = vmatpush.msrb.mxu1 %v120_v49  ;;  %435 = vmatpush.msrb.mxu2 %v181_v53  ;;  %v476_v49 = vrot.slane %v2075_v7, 1  ;;  %v1555_v53 = vld [vmem:[%s3525_s2 + $0x428] sm:$0xff] }
  0x35   :  { %398 = vmatpush.msrb.mxu0 %v149_v54  ;;  %644 = vmatpush.msra.mxu3 %v1598_v56  ;;  %v2403_v54 = vld [vmem:[#allocation2 + $0x28] sm:$0x3]  ;;  %v1518_v56 = vld [vmem:[%s3525_s2 + $0x300] sm:$0xff] }
  0x36   :  { %348 = vmatpush.msrb.mxu1 %v116_v52  ;;  %436 = vmatpush.msrb.mxu2 %v177_v3  ;;  %v1522_v52 = vld [vmem:[%s3525_s2 + $0x320] sm:$0xff]  ;;  %v2420_v3 = vsel %vm474_vm5, %v475_v48, %v476_v49 }
  0x37   :  { %399 = vmatpush.msrb.mxu0 %v145_v57  ;;  %645 = vmatpush.msra.mxu3 %v1594_v58  ;;  %v1592_v57 = vld [vmem:[%s3525_s2 + $0x550] sm:$0xff]  ;;  %v483_v58 = vrot.slane %v2403_v54, 1  ;;  %v1714_v48 = vld [vmem:[%s3525_s2 + $0x8a0] sm:$0xff] }
  0x38   :  { %1510 = vmatmul.msk.f32.vlgmr.msrb.gmra.mxu3 %vm20_vm0, %v2008_v46  ;;  %349 = vmatpush.msrb.mxu1 %v112_v55  ;;  %v1583_v55 = vld [vmem:[%s3525_s2 + $0x508] sm:$0xff] }
  0x39   :  { %350 = vmatmul.f32.vlgmr.msrb.gmra.mxu1 %v2100_v15  ;;  %400 = vmatpush.msrb.mxu0 %v141_v39  ;;  %v1580_v39 = vld [vmem:[%s3525_s2 + $0x4f0] sm:$0xff] }
  0x3a   :  { %604 = vmatpush.msra.mxu1 %v1578_v36  ;;  %243 = vmatmul.f32.gmra.mxu0 %v2145_v30  ;;  %v1551_v36 = vld [vmem:[%s3525_s2 + $0x408] sm:$0xff] }
  0x3b   :  { %301 = vmatmul.f32.gmra.mxu2 %v2145_v30  ;;  %401 = vmatpush.msrb.mxu0 %v137_v60  ;;  %v1547_v60 = vld [vmem:[%s3525_s2 + $0x3e8] sm:$0xff] }
  0x3c   :  { %605 = vmatpush.msra.mxu1 %v1574_v59  ;;  %646 = vmatpush.msra.mxu3 %v1590_v61  ;;  %v2426_v59 = vld [vmem:[#allocation2 + $0x20] sm:$0x3]  ;;  %v1576_v61 = vld [vmem:[%s3525_s2 + $0x4d0] sm:$0xff] }
  0x3d   :  { %699 = vmatpush.msra.mxu2 %v1611_v62  ;;  %402 = vmatpush.msrb.mxu0 %v133_v0  ;;  %v1613_v62 = vld [vmem:[%s3525_s2 + $0x5f8] sm:$0xff]  ;;  %v481_v0 = vrot.slane %v2426_v59, 1 }
  0x3e   :  { %606 = vmatpush.msra.mxu1 %v1570_v63  ;;  %647 = vmatpush.msra.mxu3 %v1586_v1  ;;  %v1543_v63 = vld [vmem:[%s3525_s2 + $0x3c8] sm:$0xff]  ;;  %v1588_v1 = vld [vmem:[%s3525_s2 + $0x530] sm:$0xff] }
  0x3f   :  { %700 = vmatpush.msra.mxu2 %v1607_v5  ;;  %403 = vmatpush.msrb.mxu0 %v129_v6  ;;  %v1572_v5 = vld [vmem:[%s3525_s2 + $0x4b0] sm:$0xff]  ;;  %v1539_v6 = vld [vmem:[%s3525_s2 + $0x3a8] sm:$0xff] }
  0x40   :  { %1511 = vmatmul.msk.f32.gmra.mxu3 %vm20_vm0, %v2063_v2  ;;  %607 = vmatpush.msra.mxu1 %v1566_v4  ;;  %v2449_v4 = vsel %vm474_vm5, %v479_v41, %v483_v58  ;;  %v1581_v41 = vld [vmem:[%s3525_s2 + $0x4f8] sm:$0xff] }
  0x41   :  { %353 = vmatmul.f32.gmra.mxu1 %v2075_v7  ;;  %648 = vmatpush.msra.mxu3 %v1582_v9  ;;  %v1568_v9 = vld [vmem:[%s3525_s2 + $0x490] sm:$0xff]  ;;  %v1565_v58 = vld [vmem:[%s3525_s2 + $0x478] sm:$0xff] }
  0x42   :  { %608 = vmatpush.msra.mxu1 %v1562_v8  ;;  %404 = vmatpush.msrb.mxu0 %v125_v10  ;;  %v1609_v8 = vld [vmem:[%s3525_s2 + $0x5d8] sm:$0xff]  ;;  %v1584_v10 = vld [vmem:[%s3525_s2 + $0x510] sm:$0xff] }
  0x43   :  { %1514 = vmatmul.msk.f32.vlgmr.msrb.gmra.mxu2 %vm20_vm0, %v2008_v46  ;;  %757 = vmatpush.msrb.mxu3 %v1612_v14  ;;  %v488_v14 = vrot.slane %v2119_v21, 1 }
  0x44   :  { %609 = vmatpush.msra.mxu1 %v1558_v11  ;;  %701 = vmatpush.msra.mxu2 %v1603_v12  ;;  %v1535_v11 = vld [vmem:[%s3525_s2 + $0x388] sm:$0xff]  ;;  %v2472_v12 = vsel %vm474_vm5, %v476_v49, %v481_v0  ;;  %v1524_v0 = vld [vmem:[%s3525_s2 + $0x330] sm:$0xff] }
  0x45   :  { %405 = vmatpush.msrb.mxu0 %v121_v13  ;;  %758 = vmatpush.msrb.mxu3 %v1608_v20  ;;  %v1564_v13 = vld [vmem:[%s3525_s2 + $0x470] sm:$0xff]  ;;  %v1527_v20 = vld [vmem:[%s3525_s2 + $0x348] sm:$0xff] }
  0x46   :  { %610 = vmatpush.msra.mxu1 %v1554_v16  ;;  %702 = vmatpush.msra.mxu2 %v1599_v18  ;;  %v489_v16 = vrot.slane %v2169_v38, 1  ;;  %v1560_v18 = vld [vmem:[%s3525_s2 + $0x450] sm:$0xff] }
  0x47   :  { %406 = vmatpush.msrb.mxu0 %v117_v17  ;;  %759 = vmatpush.msrb.mxu3 %v1604_v28  ;;  %v1531_v17 = vld [vmem:[%s3525_s2 + $0x368] sm:$0xff]  ;;  %v2509_v28 = vld [vmem:[#allocation2 + $0x58] sm:$0x3] }
  0x48   :  { %1512 = vmatmul.msk.f32.gmra.mxu3 %vm20_vm0, %v2119_v21  ;;  %611 = vmatpush.msra.mxu1 %v1550_v19  ;;  %v1605_v19 = vld [vmem:[%s3525_s2 + $0x5b8] sm:$0xff] }
  0x49   :  { %407 = vmatpush.msrb.mxu0 %v113_v22  ;;  %356 = vmatmul.f32.gmra.mxu1 %v2191_v47  ;;  %v485_v22 = vrot.slane %v2191_v47, 1 }
  0x4a   :  { %408 = vmatmul.f32.vlgmr.msrb.gmra.mxu0 %v2100_v15  ;;  %612 = vmatpush.msra.mxu1 %v1546_v23  ;;  %v486_v23 = vrot.slane %v2145_v30, 1 }
  0x4b   :  { %662 = vmatpush.msra.mxu0 %v1579_v24  ;;  %1515 = vmatmul.msk.f32.gmra.mxu2 %vm20_vm0, %v2063_v2  ;;  %v1722_v24 = vld [vmem:[%s3525_s2 + $0x8e0] sm:$0xff] }
  0x4c   :  { %613 = vmatpush.msra.mxu1 %v1542_v25  ;;  %703 = vmatpush.msra.mxu2 %v1595_v26  ;;  %v2499_v25 = vsel %vm474_vm5, %v488_v14, %v489_v16  ;;  %v1556_v26 = vld [vmem:[%s3525_s2 + $0x430] sm:$0xff]  ;;  %v1723_v14 = vld [vmem:[%s3525_s2 + $0x8e8] sm:$0xff] }
  0x4d   :  { %663 = vmatpush.msra.mxu0 %v1575_v27  ;;  %760 = vmatpush.msrb.mxu3 %v1600_v34  ;;  %v1523_v27 = vld [vmem:[%s3525_s2 + $0x328] sm:$0xff]  ;;  %v2526_v34 = vsel %vm474_vm5, %v485_v22, %v486_v23  ;;  %v1678_v22 = vld [vmem:[%s3525_s2 + $0x780] sm:$0xff] }
  0x4e   :  { %614 = vmatpush.msra.mxu1 %v1538_v29  ;;  %704 = vmatpush.msra.mxu2 %v1591_v32  ;;  %v1601_v29 = vld [vmem:[%s3525_s2 + $0x598] sm:$0xff]  ;;  %v1718_v32 = vld [vmem:[%s3525_s2 + $0x8c0] sm:$0xff] }
  0x4f   :  { %664 = vmatpush.msra.mxu0 %v1571_v31  ;;  %761 = vmatpush.msrb.mxu3 %v1596_v50  ;;  %v1552_v31 = vld [vmem:[%s3525_s2 + $0x410] sm:$0xff] }
  0x50   :  { %1513 = vmatmul.msk.f32.gmra.mxu3 %vm20_vm0, %v2169_v38  ;;  %615 = vmatpush.msra.mxu1 %v1534_v33  ;;  %v1519_v33 = vld [vmem:[%s3525_s2 + $0x308] sm:$0xff]  ;;  %v1540_v50 = vld [vmem:[%s3525_s2 + $0x3b0] sm:$0xff] }
  0x51   :  { %665 = vmatpush.msra.mxu0 %v1567_v35  ;;  %359 = vmatmul.f32.gmra.mxu1 %v2145_v30  ;;  %v1548_v35 = vld [vmem:[%s3525_s2 + $0x3f0] sm:$0xff] }
  0x52   :  { %411 = vmatmul.f32.gmra.mxu0 %v2075_v7  ;;  %616 = vmatpush.msra.mxu1 %v1530_v37  ;;  %v493_v37 = vrot.slane %v2509_v28, 1 }
  0x53   :  { %666 = vmatpush.msra.mxu0 %v1563_v42  ;;  %1516 = vmatmul.msk.f32.gmra.mxu2 %vm20_vm0, %v2119_v21  ;;  %v1544_v42 = vld [vmem:[%s3525_s2 + $0x3d0] sm:$0xff] }
  0x54   :  { %617 = vmatpush.msra.mxu1 %v1526_v43  ;;  %705 = vmatpush.msra.mxu2 %v1587_v44  ;;  %v1597_v43 = vld [vmem:[%s3525_s2 + $0x578] sm:$0xff]  ;;  %v2553_v49 = vsel %vm474_vm5, %v489_v16, %v493_v37 }
  0x55   :  { %667 = vmatpush.msra.mxu0 %v1559_v45  ;;  %762 = vmatpush.msrb.mxu3 %v1592_v57  ;;  %v1577_v44 = vld [vmem:[%s3525_s2 + $0x4d8] sm:$0xff]  ;;  %v491_v45 = vrot.slane %v2532_v40, 1 }
  0x56   :  { %618 = vmatpush.msra.mxu1 %v1522_v52  ;;  %706 = vmatpush.msra.mxu2 %v1583_v55  ;;  %v1573_v52 = vld [vmem:[%s3525_s2 + $0x4b8] sm:$0xff]  ;;  %v1536_v55 = vld [vmem:[%s3525_s2 + $0x390] sm:$0xff] }
  0x57   :  { %668 = vmatpush.msra.mxu0 %v1555_v53  ;;  %763 = vmatpush.msrb.mxu3 %v1588_v1  ;;  %v1593_v53 = vld [vmem:[%s3525_s2 + $0x558] sm:$0xff] }
  0x58   :  { %1614 = vmatmul.msk.f32.vlgmr.msra.gmra.mxu3 %vm20_vm0, %v2395_v51  ;;  %619 = vmatpush.msra.mxu1 %v1518_v56  ;;  %v1710_v56 = vld [vmem:[%s3525_s2 + $0x880] sm:$0xff]  ;;  %v1569_v57 = vld [vmem:[%s3525_s2 + $0x498] sm:$0xff] }
  0x59   :  { %669 = vmatpush.msra.mxu0 %v1551_v36  ;;  %620 = vmatmul.f32.vlgmr.msra.gmra.mxu1 %v2420_v3  ;;  %v2578_v36 = vsel %vm474_vm5, %v486_v23, %v491_v45  ;;  %v1557_v1 = vld [vmem:[%s3525_s2 + $0x438] sm:$0xff]  ;;  %v1694_v23 = vld [vmem:[%s3525_s2 + $0x800] sm:$0xff]  ;;  %v1691_v45 = vld [vmem:[%s3525_s2 + $0x7e8] sm:$0xff] }
  0x5a   :  { %414 = vmatmul.f32.gmra.mxu0 %v2191_v47  ;;  %720 = vmatpush.msrb.mxu1 %v1580_v39  ;;  %v1532_v39 = vld [vmem:[%s3525_s2 + $0x370] sm:$0xff]  ;;  %v1545_v16 = vld [vmem:[%s3525_s2 + $0x3d8] sm:$0xff] }
  0x5b   :  { %670 = vmatpush.msra.mxu0 %v1547_v60  ;;  %1517 = vmatmul.msk.f32.gmra.mxu2 %vm20_vm0, %v2169_v38  ;;  %v1528_v60 = vld [vmem:[%s3525_s2 + $0x350] sm:$0xff]  ;;  %v1525_v37 = vld [vmem:[%s3525_s2 + $0x338] sm:$0xff] }
  0x5c   :  { %721 = vmatpush.msrb.mxu1 %v1576_v61  ;;  %815 = vmatpush.msrb.mxu2 %v1613_v62  ;;  %v1589_v61 = vld [vmem:[%s3525_s2 + $0x538] sm:$0xff] }
  0x5d   :  { %671 = vmatpush.msra.mxu0 %v1543_v63  ;;  %764 = vmatpush.msrb.mxu3 %v1584_v10  ;;  %v1561_v62 = vld [vmem:[%s3525_s2 + $0x458] sm:$0xff]  ;;  %v1706_v63 = vld [vmem:[%s3525_s2 + $0x860] sm:$0xff] }
  0x5e   :  { %722 = vmatpush.msrb.mxu1 %v1572_v5  ;;  %816 = vmatpush.msrb.mxu2 %v1609_v8  ;;  %v1585_v5 = vld [vmem:[%s3525_s2 + $0x518] sm:$0xff]  ;;  %v1702_v8 = vld [vmem:[%s3525_s2 + $0x840] sm:$0xff] }
  0x5f   :  { %672 = vmatpush.msra.mxu0 %v1539_v6  ;;  %1019 = vmatpush.msra.mxu3 %v1722_v24  ;;  %v1520_v6 = vld [vmem:[%s3525_s2 + $0x310] sm:$0xff]  ;;  %v1690_v10 = vld [vmem:[%s3525_s2 + $0x7e0] sm:$0xff]  ;;  %v1537_v24 = vld [vmem:[%s3525_s2 + $0x398] sm:$0xff] }
  0x60   :  { %1615 = vmatmul.msk.f32.gmra.mxu3 %vm20_vm0, %v2449_v4  ;;  %723 = vmatpush.msrb.mxu1 %v1568_v9  ;;  %v1553_v9 = vld [vmem:[%s3525_s2 + $0x418] sm:$0xff] }
  0x61   :  { %673 = vmatpush.msra.mxu0 %v1535_v11  ;;  %623 = vmatmul.f32.gmra.mxu1 %v2472_v12  ;;  %v1549_v11 = vld [vmem:[%s3525_s2 + $0x3f8] sm:$0xff] }
  0x62   :  { %417 = vmatmul.f32.gmra.mxu0 %v2145_v30  ;;  %724 = vmatpush.msrb.mxu1 %v1564_v13  ;;  %v1686_v13 = vld [vmem:[%s3525_s2 + $0x7c0] sm:$0xff] }
  0x63   :  { %674 = vmatpush.msra.mxu0 %v1531_v17  ;;  %1618 = vmatmul.msk.f32.vlgmr.msra.gmra.mxu2 %vm20_vm0, %v2395_v51  ;;  %v1698_v17 = vld [vmem:[%s3525_s2 + $0x820] sm:$0xff] }
  0x64   :  { %725 = vmatpush.msrb.mxu1 %v1560_v18  ;;  %817 = vmatpush.msrb.mxu2 %v1605_v19  ;;  %v1682_v18 = vld [vmem:[%s3525_s2 + $0x7a0] sm:$0xff]  ;;  %v1541_v19 = vld [vmem:[%s3525_s2 + $0x3b8] sm:$0xff] }
  0x65   :  { %675 = vmatpush.msra.mxu0 %v1527_v20  ;;  %1020 = vmatpush.msra.mxu3 %v1718_v32  ;;  %v1719_v20 = vld [vmem:[%s3525_s2 + $0x8c8] sm:$0xff]  ;;  %v1529_v32 = vld [vmem:[%s3525_s2 + $0x358] sm:$0xff] }
  0x66   :  { %726 = vmatpush.msrb.mxu1 %v1556_v26  ;;  %818 = vmatpush.msrb.mxu2 %v1601_v29  ;;  %v1674_v26 = vld [vmem:[%s3525_s2 + $0x760] sm:$0xff] }
  0x67   :  { %676 = vmatpush.msra.mxu0 %v1523_v27  ;;  %1021 = vmatpush.msra.mxu3 %v1714_v48  ;;  %v1533_v27 = vld [vmem:[%s3525_s2 + $0x378] sm:$0xff]  ;;  %v1670_v29 = vld [vmem:[%s3525_s2 + $0x740] sm:$0xff] }
  0x68   :  { %1616 = vmatmul.msk.f32.gmra.mxu3 %vm20_vm0, %v2499_v25  ;;  %727 = vmatpush.msrb.mxu1 %v1552_v31  ;;  %v1715_v31 = vld [vmem:[%s3525_s2 + $0x8a8] sm:$0xff]  ;;  %v1654_v48 = vld [vmem:[%s3525_s2 + $0x6c0] sm:$0xff] }
  0x69   :  { %677 = vmatpush.msra.mxu0 %v1519_v33  ;;  %626 = vmatmul.f32.gmra.mxu1 %v2526_v34  ;;  %v1724_v33 = vld [vmem:[%s3525_s2 + $0x8f0] sm:$0xff] }
  0x6a   :  { %678 = vmatmul.f32.vlgmr.msra.gmra.mxu0 %v2420_v3  ;;  %728 = vmatpush.msrb.mxu1 %v1548_v35  ;;  %v1666_v35 = vld [vmem:[%s3525_s2 + $0x720] sm:$0xff] }
  0x6b   :  { %778 = vmatpush.msrb.mxu0 %v1581_v41  ;;  %1619 = vmatmul.msk.f32.gmra.mxu2 %vm20_vm0, %v2449_v4  ;;  %v1711_v41 = vld [vmem:[%s3525_s2 + $0x888] sm:$0xff] }
  0x6c   :  { %729 = vmatpush.msrb.mxu1 %v1544_v42  ;;  %819 = vmatpush.msrb.mxu2 %v1597_v43  ;;  %v1662_v42 = vld [vmem:[%s3525_s2 + $0x700] sm:$0xff]  ;;  %v1521_v43 = vld [vmem:[%s3525_s2 + $0x318] sm:$0xff] }
  0x6d   :  { %779 = vmatpush.msrb.mxu0 %v1577_v44  ;;  %1022 = vmatpush.msra.mxu3 %v1710_v56  ;;  %v1658_v44 = vld [vmem:[%s3525_s2 + $0x6e0] sm:$0xff]  ;;  %v1703_v56 = vld [vmem:[%s3525_s2 + $0x848] sm:$0xff] }
  0x6e   :  { %730 = vmatpush.msrb.mxu1 %v1540_v50  ;;  %820 = vmatpush.msrb.mxu2 %v1593_v53  ;;  %v1707_v50 = vld [vmem:[%s3525_s2 + $0x868] sm:$0xff]  ;;  %v1716_v53 = vld [vmem:[%s3525_s2 + $0x8b0] sm:$0xff] }
  0x6f   :  { %780 = vmatpush.msrb.mxu0 %v1573_v52  ;;  %1023 = vmatpush.msra.mxu3 %v1706_v63  ;;  %v1687_v52 = vld [vmem:[%s3525_s2 + $0x7c8] sm:$0xff]  ;;  %v1638_v63 = vld [vmem:[%s3525_s2 + $0x640] sm:$0xff] }
  0x70   :  { %1617 = vmatmul.msk.f32.gmra.mxu3 %vm20_vm0, %v2553_v49  ;;  %731 = vmatpush.msrb.mxu1 %v1536_v55  ;;  %v1650_v55 = vld [vmem:[%s3525_s2 + $0x6a0] sm:$0xff] }
  0x71   :  { %781 = vmatpush.msrb.mxu0 %v1569_v57  ;;  %629 = vmatmul.f32.gmra.mxu1 %v2578_v36  ;;  %v1646_v57 = vld [vmem:[%s3525_s2 + $0x680] sm:$0xff] }
  0x72   :  { %681 = vmatmul.f32.gmra.mxu0 %v2472_v12  ;;  %732 = vmatpush.msrb.mxu1 %v1532_v39  ;;  %v1679_v39 = vld [vmem:[%s3525_s2 + $0x788] sm:$0xff] }
  0x73   :  { %782 = vmatpush.msrb.mxu0 %v1565_v58  ;;  %1620 = vmatmul.msk.f32.gmra.mxu2 %vm20_vm0, %v2499_v25  ;;  %v1642_v58 = vld [vmem:[%s3525_s2 + $0x660] sm:$0xff] }
  0x74   :  { %733 = vmatpush.msrb.mxu1 %v1528_v60  ;;  %821 = vmatpush.msrb.mxu2 %v1589_v61  ;;  %v856_v60 = vrot.slane %v2008_v46, 2  ;;  %v857_v61 = vrot.slane %v2063_v2, 2  ;;  %v1699_v46 = vld [vmem:[%s3525_s2 + $0x828] sm:$0xff] }
  0x75   :  { %783 = vmatpush.msrb.mxu0 %v1561_v62  ;;  %1024 = vmatpush.msra.mxu3 %v1702_v8  ;;  %v1675_v62 = vld [vmem:[%s3525_s2 + $0x768] sm:$0xff] }
  0x76   :  { %734 = vmatpush.msrb.mxu1 %v1524_v0  ;;  %822 = vmatpush.msrb.mxu2 %v1585_v5  ;;  %v1671_v2 = vld [vmem:[%s3525_s2 + $0x748] sm:$0xff]  ;;  %v853_v0 = vrot.slane %v2100_v15, 2  ;;  %v1708_v5 = vld [vmem:[%s3525_s2 + $0x870] sm:$0xff] }
  0x77   :  { %784 = vmatpush.msrb.mxu0 %v1557_v1  ;;  %1025 = vmatpush.msra.mxu3 %v1698_v17  ;;  %v854_v1 = vrot.slane %v2075_v7, 2  ;;  %v1667_v7 = vld [vmem:[%s3525_s2 + $0x728] sm:$0xff] }
  0x78   :  { %1622 = vmatmul.msk.f32.vlgmr.msrb.gmra.mxu3 %vm20_vm0, %v2395_v51  ;;  %735 = vmatpush.msrb.mxu1 %v1520_v6  ;;  %v2775_v6 = vsel %vm852_vm6, %v856_v60, %v857_v61  ;;  %v1695_v15 = vld [vmem:[%s3525_s2 + $0x808] sm:$0xff]  ;;  %v2914_v60 = vld [vmem:[%s3525_s2 + $0x7f8] sm:$0xff] }
  0x79   :  { %785 = vmatpush.msrb.mxu0 %v1553_v9  ;;  %736 = vmatmul.f32.vlgmr.msrb.gmra.mxu1 %v2420_v3  ;;  %v1704_v9 = vld [vmem:[%s3525_s2 + $0x850] sm:$0xff] }
  0x7a   :  { %684 = vmatmul.f32.gmra.mxu0 %v2526_v34  ;;  %982 = vmatpush.msra.mxu1 %v1690_v10  ;;  %v1663_v10 = vld [vmem:[%s3525_s2 + $0x708] sm:$0xff] }
  0x7b   :  { %786 = vmatpush.msrb.mxu0 %v1549_v11  ;;  %1621 = vmatmul.msk.f32.gmra.mxu2 %vm20_vm0, %v2553_v49  ;;  %v2798_v11 = vsel %vm852_vm6, %v853_v0, %v854_v1  ;;  %v1652_v0 = vld [vmem:[%s3525_s2 + $0x6b0] sm:$0xff] }
  0x7c   :  { %983 = vmatpush.msra.mxu1 %v1686_v13  ;;  %1077 = vmatpush.msra.mxu2 %v1723_v14  ;;  %v1692_v13 = vld [vmem:[%s3525_s2 + $0x7f0] sm:$0xff]  ;;  %v861_v14 = vrot.slane %v2403_v54, 2  ;;  %v1725_v54 = vld [vmem:[%s3525_s2 + $0x8f8] sm:$0xff] }
  0x7d   :  { %787 = vmatpush.msrb.mxu0 %v1545_v16  ;;  %1026 = vmatpush.msra.mxu3 %v1694_v23  ;;  %v1659_v16 = vld [vmem:[%s3525_s2 + $0x6e8] sm:$0xff] }
  0x7e   :  { %984 = vmatpush.msra.mxu1 %v1682_v18  ;;  %1078 = vmatpush.msra.mxu2 %v1719_v20  ;;  %v1688_v18 = vld [vmem:[%s3525_s2 + $0x7d0] sm:$0xff]  ;;  %v859_v20 = vrot.slane %v2426_v59, 2  ;;  %v2827_v23 = vsel %vm852_vm6, %v857_v61, %v861_v14  ;;  %v1651_v59 = vld [vmem:[%s3525_s2 + $0x6a8] sm:$0xff]  ;;  %v1677_v14 = vld [vmem:[%s3525_s2 + $0x778] sm:$0xff] }
  0x7f   :  { %788 = vmatpush.msrb.mxu0 %v1541_v19  ;;  %1135 = vmatpush.msrb.mxu3 %v1724_v33  ;;  %v1655_v19 = vld [vmem:[%s3525_s2 + $0x6c8] sm:$0xff]  ;;  %v1676_v33 = vld [vmem:[%s3525_s2 + $0x770] sm:$0xff] }
  0x80   :  { %1623 = vmatmul.msk.f32.gmra.mxu3 %vm20_vm0, %v2449_v4  ;;  %985 = vmatpush.msra.mxu1 %v1678_v22  ;;  %v1700_v22 = vld [vmem:[%s3525_s2 + $0x830] sm:$0xff] }
  0x81   :  { %789 = vmatpush.msrb.mxu0 %v1537_v24  ;;  %739 = vmatmul.f32.gmra.mxu1 %v2472_v12  ;;  %v1721_v24 = vld [vmem:[%s3525_s2 + $0x8d8] sm:$0xff] }
  0x82   :  { %687 = vmatmul.f32.gmra.mxu0 %v2578_v36  ;;  %986 = vmatpush.msra.mxu1 %v1674_v26 }
  0x83   :  { %790 = vmatpush.msrb.mxu0 %v1533_v27  ;;  %1626 = vmatmul.msk.f32.vlgmr.msrb.gmra.mxu2 %vm20_vm0, %v2395_v51  ;;  %v1720_v51 = vld [vmem:[%s3525_s2 + $0x8d0] sm:$0xff] }
  0x84   :  { %987 = vmatpush.msra.mxu1 %v1670_v29  ;;  %1079 = vmatpush.msra.mxu2 %v1715_v31  ;;  %v1696_v27 = vld [vmem:[%s3525_s2 + $0x810] sm:$0xff]  ;;  %v1647_v29 = vld [vmem:[%s3525_s2 + $0x688] sm:$0xff]  ;;  %v2850_v31 = vsel %vm852_vm6, %v854_v1, %v859_v20  ;;  %v2942_v1 = vld [vmem:[%s3525_s2 + $0x7b8] sm:$0xff] }
  0x85   :  { %791 = vmatpush.msrb.mxu0 %v1529_v32  ;;  %1136 = vmatpush.msrb.mxu3 %v1720_v51  ;;  %v1669_v20 = vld [vmem:[%s3525_s2 + $0x738] sm:$0xff] }
  0x86   :  { %988 = vmatpush.msra.mxu1 %v1666_v35  ;;  %1080 = vmatpush.msra.mxu2 %v1711_v41  ;;  %v866_v35 = vrot.slane %v2119_v21, 2  ;;  %v1672_v21 = vld [vmem:[%s3525_s2 + $0x750] sm:$0xff] }
  0x87   :  { %792 = vmatpush.msrb.mxu0 %v1525_v37  ;;  %1137 = vmatpush.msrb.mxu3 %v1716_v53  ;;  %v867_v37 = vrot.slane %v2169_v38, 2  ;;  %v1717_v38 = vld [vmem:[%s3525_s2 + $0x8b8] sm:$0xff] }
  0x88   :  { %1624 = vmatmul.msk.f32.gmra.mxu3 %vm20_vm0, %v2499_v25  ;;  %989 = vmatpush.msra.mxu1 %v1662_v42  ;;  %v1643_v42 = vld [vmem:[%s3525_s2 + $0x668] sm:$0xff] }
  0x89   :  { %793 = vmatpush.msrb.mxu0 %v1521_v43  ;;  %742 = vmatmul.f32.gmra.mxu1 %v2526_v34  ;;  %v1639_v43 = vld [vmem:[%s3525_s2 + $0x648] sm:$0xff] }
  0x8a   :  { %794 = vmatmul.f32.vlgmr.msrb.gmra.mxu0 %v2420_v3  ;;  %990 = vmatpush.msra.mxu1 %v1658_v44  ;;  %v1683_v3 = vld [vmem:[%s3525_s2 + $0x7a8] sm:$0xff]  ;;  %v863_v44 = vrot.slane %v2191_v47, 2 }
  0x8b   :  { %1040 = vmatpush.msra.mxu0 %v1691_v45  ;;  %1627 = vmatmul.msk.f32.gmra.mxu2 %vm20_vm0, %v2449_v4  ;;  %v1712_v4 = vld [vmem:[%s3525_s2 + $0x890] sm:$0xff]  ;;  %v864_v45 = vrot.slane %v2145_v30, 2  ;;  %v1713_v30 = vld [vmem:[%s3525_s2 + $0x898] sm:$0xff] }
  0x8c   :  { %991 = vmatpush.msra.mxu1 %v1654_v48  ;;  %1081 = vmatpush.msra.mxu2 %v1707_v50  ;;  %v2878_v48 = vsel %vm852_vm6, %v866_v35, %v867_v37  ;;  %v1635_v50 = vld [vmem:[%s3525_s2 + $0x628] sm:$0xff] }
  0x8d   :  { %1041 = vmatpush.msra.mxu0 %v1687_v52  ;;  %1138 = vmatpush.msrb.mxu3 %v1712_v4  ;;  %v1664_v52 = vld [vmem:[%s3525_s2 + $0x710] sm:$0xff] }
  0x8e   :  { %992 = vmatpush.msra.mxu1 %v1650_v55  ;;  %1082 = vmatpush.msra.mxu2 %v1703_v56  ;;  %v1631_v55 = vld [vmem:[%s3525_s2 + $0x608] sm:$0xff]  ;;  %v1660_v4 = vld [vmem:[%s3525_s2 + $0x6f0] sm:$0xff] }
  0x8f   :  { %1042 = vmatpush.msra.mxu0 %v1683_v3  ;;  %1139 = vmatpush.msrb.mxu3 %v1708_v5  ;;  %v2900_v3 = vsel %vm852_vm6, %v863_v44, %v864_v45  ;;  %v1645_v44 = vld [vmem:[%s3525_s2 + $0x678] sm:$0xff] }
  0x90   :  { %1625 = vmatmul.msk.f32.gmra.mxu3 %vm20_vm0, %v2553_v49  ;;  %993 = vmatpush.msra.mxu1 %v1646_v57 }
  0x91   :  { %1043 = vmatpush.msra.mxu0 %v1679_v39  ;;  %745 = vmatmul.f32.gmra.mxu1 %v2578_v36  ;;  %v871_v39 = vrot.slane %v2509_v28, 2  ;;  %v1709_v28 = vld [vmem:[%s3525_s2 + $0x878] sm:$0xff] }
  0x92   :  { %797 = vmatmul.f32.gmra.mxu0 %v2472_v12  ;;  %994 = vmatpush.msra.mxu1 %v1642_v58  ;;  %v1634_v12 = vld [vmem:[%s3525_s2 + $0x620] sm:$0xff] }
  0x93   :  { %1044 = vmatpush.msra.mxu0 %v1675_v62  ;;  %1628 = vmatmul.msk.f32.gmra.mxu2 %vm20_vm0, %v2499_v25  ;;  %v1630_v25 = vld [vmem:[%s3525_s2 + $0x600] sm:$0xff]  ;;  %v1656_v62 = vld [vmem:[%s3525_s2 + $0x6d0] sm:$0xff] }
  0x94   :  { %995 = vmatpush.msra.mxu1 %v1638_v63  ;;  %1083 = vmatpush.msra.mxu2 %v1699_v46  ;;  %v2927_v63 = vld [vmem:[%s3525_s2 + $0x7d8] sm:$0xff]  ;;  %v869_v46 = vrot.slane %v2532_v40, 2 }
  0x95   :  { %v264_v8 = vpop.f32.mrf.mxu1  ;;  %1045 = vmatpush.msra.mxu0 %v1671_v2  ;;  %1140 = vmatpush.msrb.mxu3 %v1704_v9  ;;  %v2932_v2 = vsel %vm852_vm6, %v867_v37, %v871_v39  ;;  %v1705_v40 = vld [vmem:[%s3525_s2 + $0x858] sm:$0xff] }
  0x96   :  { %996 = vmatpush.msra.mxu1 %v1634_v12  ;;  %1084 = vmatpush.msra.mxu2 %v1695_v15  ;;  %v1648_v12 = vld [vmem:[%s3525_s2 + $0x690] sm:$0xff]  ;;  %v2957_v15 = vsel %vm852_vm6, %v864_v45, %v869_v46  ;;  %v1657_v37 = vld [vmem:[%s3525_s2 + $0x6d8] sm:$0xff] }
  0x97   :  { %1046 = vmatpush.msra.mxu0 %v1667_v7  ;;  %1141 = vmatpush.msrb.mxu3 %v1700_v22  ;;  %v1681_v7 = vld [vmem:[%s3525_s2 + $0x798] sm:$0xff] }
  0x98   :  { %1726 = vmatmul.msk.f32.vlgmr.msra.gmra.mxu3 %vm20_vm0, %v2775_v6  ;;  %997 = vmatpush.msra.mxu1 %v1630_v25  ;;  %v1697_v22 = vld [vmem:[%s3525_s2 + $0x818] sm:$0xff] }
  0x99   :  { %1047 = vmatpush.msra.mxu0 %v1663_v10  ;;  %998 = vmatmul.f32.vlgmr.msra.gmra.mxu1 %v2798_v11  ;;  %v1644_v10 = vld [vmem:[%s3525_s2 + $0x670] sm:$0xff] }
  0x9a   :  { %800 = vmatmul.f32.gmra.mxu0 %v2526_v34  ;;  %1098 = vmatpush.msrb.mxu1 %v1692_v13  ;;  %v1684_v34 = vld [vmem:[%s3525_s2 + $0x7b0] sm:$0xff] }
  0x9b   :  { %v2807_v17 = vpop.f32.mrf.mxu3  ;;  %1048 = vmatpush.msra.mxu0 %v1659_v16  ;;  %1629 = vmatmul.msk.f32.gmra.mxu2 %vm20_vm0, %v2553_v49  ;;  %v1680_v49 = vld [vmem:[%s3525_s2 + $0x790] sm:$0xff] }
  0x9c   :  { %1099 = vmatpush.msrb.mxu1 %v1688_v18  ;;  %1193 = vmatpush.msrb.mxu2 %v1725_v54  ;;  %v1701_v18 = vld [vmem:[%s3525_s2 + $0x838] sm:$0xff] }
  0x9d   :  { %1049 = vmatpush.msra.mxu0 %v1655_v19  ;;  %1142 = vmatpush.msrb.mxu3 %v1696_v27  ;;  %v1636_v19 = vld [vmem:[%s3525_s2 + $0x630] sm:$0xff] }
  0x9e   :  { %v267_v26 = vpop.f32.mrf.mxu1  ;;  %1100 = vmatpush.msrb.mxu1 %v1684_v34  ;;  %1194 = vmatpush.msrb.mxu2 %v1721_v24 }
  0x9f   :  { %1050 = vmatpush.msra.mxu0 %v1651_v59  ;;  %v235_v32 = vpop.f32.mrf.mxu0  ;;  %1758 = vmatpush.msra.mxu3 %v1725_v54  ;;  %v1673_v54 = vld [vmem:[%s3525_s2 + $0x758] sm:$0xff]  ;;  %v1632_v59 = vld [vmem:[%s3525_s2 + $0x610] sm:$0xff] }
  0xa0   :  { %1727 = vmatmul.msk.f32.gmra.mxu3 %vm20_vm0, %v2827_v23  ;;  %1101 = vmatpush.msrb.mxu1 %v1680_v49  ;;  %v2857_v41 = vadd.f32 %v264_v8, %v235_v32 }
  0xa1   :  { %1051 = vmatpush.msra.mxu0 %v1647_v29  ;;  %1001 = vmatmul.f32.gmra.mxu1 %v2850_v31  ;;  %v1661_v29 = vld [vmem:[%s3525_s2 + $0x6f8] sm:$0xff] }
  0xa2   :  { %803 = vmatmul.f32.gmra.mxu0 %v2578_v36  ;;  %1102 = vmatpush.msrb.mxu1 %v1676_v33  ;;  %v1668_v36 = vld [vmem:[%s3525_s2 + $0x730] sm:$0xff] }
  0xa3   :  { %v2862_v51 = vpop.f32.mrf.mxu3  ;;  %1052 = vmatpush.msra.mxu0 %v1643_v42  ;;  %1730 = vmatmul.msk.f32.vlgmr.msra.gmra.mxu2 %vm20_vm0, %v2775_v6  ;;  %v1653_v42 = vld [vmem:[%s3525_s2 + $0x6b8] sm:$0xff] }
  0xa4   :  { %1103 = vmatpush.msrb.mxu1 %v1672_v21  ;;  %1195 = vmatpush.msrb.mxu2 %v1717_v38 }
  0xa5   :  { %1053 = vmatpush.msra.mxu0 %v1639_v43  ;;  %1759 = vmatpush.msra.mxu3 %v1721_v24 }
  0xa6   :  { %v270_v47 = vpop.f32.mrf.mxu1  ;;  %1104 = vmatpush.msrb.mxu1 %v1668_v36  ;;  %v293_v53 = vpop.f32.mrf.mxu2  ;;  %1196 = vmatpush.msrb.mxu2 %v1713_v30 }
  0xa7   :  { %v2903_v56 = vadd.f32 %v2807_v17, %v293_v53  ;;  %1054 = vmatpush.msra.mxu0 %v1635_v50  ;;  %v238_v57 = vpop.f32.mrf.mxu0  ;;  %1760 = vmatpush.msra.mxu3 %v1717_v38  ;;  %v1640_v17 = vld [vmem:[%s3525_s2 + $0x650] sm:$0xff]  ;;  %v1649_v38 = vld [vmem:[%s3525_s2 + $0x698] sm:$0xff] }
  0xa8   :  { %1728 = vmatmul.msk.f32.gmra.mxu3 %vm20_vm0, %v2878_v48  ;;  %1105 = vmatpush.msrb.mxu1 %v1664_v52  ;;  %v2909_v58 = vadd.f32 %v267_v26, %v238_v57  ;;  %v1665_v26 = vld [vmem:[%s3525_s2 + $0x718] sm:$0xff] }
  0xa9   :  { %1055 = vmatpush.msra.mxu0 %v1631_v55  ;;  %1004 = vmatmul.f32.gmra.mxu1 %v2900_v3  ;;  %v1641_v50 = vld [vmem:[%s3525_s2 + $0x658] sm:$0xff] }
  0xaa   :  { %1056 = vmatmul.f32.vlgmr.msra.gmra.mxu0 %v2798_v11  ;;  %1106 = vmatpush.msrb.mxu1 %v1660_v4  ;;  %v1633_v53 = vld [vmem:[%s3525_s2 + $0x618] sm:$0xff] }
  0xab   :  { %v328_v61 = vpop.f32.mrf.mxu3  ;;  %1156 = vmatpush.msrb.mxu0 %v2914_v60  ;;  %1731 = vmatmul.msk.f32.gmra.mxu2 %vm20_vm0, %v2827_v23 }
  0xac   :  { %1107 = vmatpush.msrb.mxu1 %v1656_v62  ;;  %1197 = vmatpush.msrb.mxu2 %v1709_v28 }
  0xad   :  { %1157 = vmatpush.msrb.mxu0 %v2927_v63  ;;  %1761 = vmatpush.msra.mxu3 %v1713_v30  ;;  %v1637_v30 = vld [vmem:[%s3525_s2 + $0x638] sm:$0xff] }
  0xae   :  { %v273_v5 = vpop.f32.mrf.mxu1  ;;  %1108 = vmatpush.msrb.mxu1 %v1652_v0  ;;  %v296_v8 = vpop.f32.mrf.mxu2  ;;  %1198 = vmatpush.msrb.mxu2 %v1705_v40 }
  0xaf   :  { %v2960_v25 = vadd.f32 %v2862_v51, %v296_v8  ;;  %1158 = vmatpush.msrb.mxu0 %v2942_v1  ;;  %v241_v9 = vpop.f32.mrf.mxu0  ;;  %1762 = vmatpush.msra.mxu3 %v1709_v28 }
  0xb0   :  { %1729 = vmatmul.msk.f32.gmra.mxu3 %vm20_vm0, %v2932_v2  ;;  %1109 = vmatpush.msrb.mxu1 %v1648_v12  ;;  %v2966_v13 = vadd.f32 %v270_v47, %v241_v9 }
  0xb1   :  { %1159 = vmatpush.msrb.mxu0 %v1681_v7  ;;  %1007 = vmatmul.f32.gmra.mxu1 %v2957_v15 }
  0xb2   :  { %1059 = vmatmul.f32.gmra.mxu0 %v2850_v31  ;;  %1110 = vmatpush.msrb.mxu1 %v1644_v10 }
  0xb3   :  { %v331_v16 = vpop.f32.mrf.mxu3  ;;  %1160 = vmatpush.msrb.mxu0 %v1677_v14  ;;  %1732 = vmatmul.msk.f32.gmra.mxu2 %vm20_vm0, %v2878_v48 }
  0xb4   :  { %1111 = vmatpush.msrb.mxu1 %v1640_v17  ;;  %1199 = vmatpush.msrb.mxu2 %v1701_v18 }
  0xb5   :  { %1161 = vmatpush.msrb.mxu0 %v1673_v54  ;;  %1763 = vmatpush.msra.mxu3 %v1705_v40 }
  0xb6   :  { %v351_v34 = vpop.f32.mrf.mxu1  ;;  %1112 = vmatpush.msrb.mxu1 %v1636_v19  ;;  %v299_v24 = vpop.f32.mrf.mxu2  ;;  %1200 = vmatpush.msrb.mxu2 %v1697_v22 }
  0xb7   :  { %v3001_v49 = vadd.f32 %v328_v61, %v299_v24  ;;  %1162 = vmatpush.msrb.mxu0 %v1669_v20  ;;  %v244_v27 = vpop.f32.mrf.mxu0  ;;  %1764 = vmatpush.msra.mxu3 %v1701_v18 }
  0xb8   :  { %1734 = vmatmul.msk.f32.vlgmr.msrb.gmra.mxu3 %vm20_vm0, %v2775_v6  ;;  %1113 = vmatpush.msrb.mxu1 %v1632_v59  ;;  %v3006_v33 = vadd.f32 %v273_v5, %v244_v27 }
  0xb9   :  { %1163 = vmatpush.msrb.mxu0 %v1665_v26  ;;  %1114 = vmatmul.f32.vlgmr.msrb.gmra.mxu1 %v2798_v11 }
  0xba   :  { %1062 = vmatmul.f32.gmra.mxu0 %v2900_v3  ;;  %1742 = vmatpush.msra.mxu1 %v2914_v60 }
  0xbb   :  { %v380_v32 = vpop.f32.mrf.mxu3  ;;  %1164 = vmatpush.msrb.mxu0 %v1661_v29  ;;  %1733 = vmatmul.msk.f32.gmra.mxu2 %vm20_vm0, %v2932_v2 }
  0xbc   :  { %v3009_v35 = vadd.f32 %v380_v32, %v351_v34  ;;  %1743 = vmatpush.msra.mxu1 %v2927_v63  ;;  %1765 = vmatpush.msra.mxu3 %v1697_v22 }
  0xbd   :  { %1165 = vmatpush.msrb.mxu0 %v1657_v37 }
  0xbe   :  { %v302_v51 = vpop.f32.mrf.mxu2  ;;  %v354_v21 = vpop.f32.mrf.mxu1  ;;  %1744 = vmatpush.msra.mxu1 %v2942_v1 }
  0xbf   :  { %v3028_v43 = vadd.f32 %v331_v16, %v302_v51  ;;  %1166 = vmatpush.msrb.mxu0 %v1653_v42 }
  0xc0   :  { %1735 = vmatmul.msk.f32.gmra.mxu3 %vm20_vm0, %v2827_v23  ;;  %1745 = vmatpush.msra.mxu1 %v1681_v7 }
  0xc1   :  { %1167 = vmatpush.msrb.mxu0 %v1649_v38  ;;  %1117 = vmatmul.f32.gmra.mxu1 %v2850_v31 }
  0xc2   :  { %1065 = vmatmul.f32.gmra.mxu0 %v2957_v15  ;;  %1746 = vmatpush.msra.mxu1 %v1677_v14 }
  0xc3   :  { %v383_v45 = vpop.f32.mrf.mxu3  ;;  %1168 = vmatpush.msrb.mxu0 %v1645_v44  ;;  %1738 = vmatmul.msk.f32.vlgmr.msrb.gmra.mxu2 %vm20_vm0, %v2775_v6 }
  0xc4   :  { %v3034_v36 = vadd.f32 %v383_v45, %v354_v21  ;;  %1747 = vmatpush.msra.mxu1 %v1673_v54 }
  0xc5   :  { %1169 = vmatpush.msrb.mxu0 %v1641_v50 }
  0xc6   :  { %v357_v47 = vpop.f32.mrf.mxu1  ;;  %v438_v52 = vpop.f32.mrf.mxu2  ;;  %1748 = vmatpush.msra.mxu1 %v1669_v20 }
  0xc7   :  { %v409_v55 = vpop.f32.mrf.mxu0  ;;  %1170 = vmatpush.msrb.mxu0 %v1637_v30 }
  0xc8   :  { %1736 = vmatmul.msk.f32.gmra.mxu3 %vm20_vm0, %v2878_v48  ;;  %v3050_v57 = vadd.f32 %v438_v52, %v409_v55  ;;  %1749 = vmatpush.msra.mxu1 %v1665_v26 }
  0xc9   :  { %1171 = vmatpush.msrb.mxu0 %v1633_v53  ;;  %1120 = vmatmul.f32.gmra.mxu1 %v2900_v3 }
  0xca   :  { %1172 = vmatmul.f32.vlgmr.msrb.gmra.mxu0 %v2798_v11  ;;  %1750 = vmatpush.msra.mxu1 %v1661_v29  ;;  %v3069_v11 = vld [vmem:[%s3527_s3] sm:$0xf] }
  0xcb   :  { %v386_v6 = vpop.f32.mrf.mxu3  ;;  %1739 = vmatmul.msk.f32.gmra.mxu2 %vm20_vm0, %v2827_v23  ;;  %v102_v23 = vperm.slane %v3069_v11, 0  ;;  %v103_v17 = vperm.slane %v3069_v11, 1 }
  0xcc   :  { %v3053_v4 = vadd.f32 %v386_v6, %v357_v47  ;;  %1751 = vmatpush.msra.mxu1 %v1657_v37 }
  0xcd   :  { %v450_v5 = vadd.f32 %v2857_v41, %v102_v23  ;;  %v454_v14 = vadd.f32 %v2909_v58, %v102_v23  ;;  %v458_v22 = vadd.f32 %v2966_v13, %v102_v23  ;;  %v455_v29 = vadd.f32 %v2960_v25, %v103_v17 }
  0xce   :  { %v360_v39 = vpop.f32.mrf.mxu1  ;;  %v441_v60 = vpop.f32.mrf.mxu2  ;;  %1752 = vmatpush.msra.mxu1 %v1653_v42  ;;  %v462_v42 = vadd.f32 %v3006_v33, %v102_v23  ;;  %v459_v45 = vadd.f32 %v3001_v49, %v103_v17  ;;  %v3109_v33 = vperm.slane %v3069_v11, 2  ;;  %v463_v55 = vadd.f32 %v3028_v43, %v103_v17 }
  0xcf   :  { %v412_v61 = vpop.f32.mrf.mxu0  ;;  %v3127_v43 = vperm.slane %v3069_v11, 3 }
  0xd0   :  { %1737 = vmatmul.msk.f32.gmra.mxu3 %vm20_vm0, %v2932_v2  ;;  %v3060_v62 = vadd.f32 %v441_v60, %v412_v61  ;;  %1753 = vmatpush.msra.mxu1 %v1649_v38  ;;  %v456_v60 = vadd.f32 %v3034_v36, %v3109_v33 }
  0xd1   :  { %1123 = vmatmul.f32.gmra.mxu1 %v2957_v15 }
  0xd2   :  { %1175 = vmatmul.f32.gmra.mxu0 %v2850_v31  ;;  %1754 = vmatpush.msra.mxu1 %v1645_v44  ;;  %v457_v36 = vadd.f32 %v3060_v62, %v3127_v43 }
  0xd3   :  { %v389_v28 = vpop.f32.mrf.mxu3  ;;  %1740 = vmatmul.msk.f32.gmra.mxu2 %vm20_vm0, %v2878_v48 }
  0xd4   :  { %v3063_v63 = vadd.f32 %v389_v28, %v360_v39  ;;  %1755 = vmatpush.msra.mxu1 %v1641_v50 }
  0xd6   :  { %v444_v46 = vpop.f32.mrf.mxu2  ;;  %v621_v0 = vpop.f32.mrf.mxu1  ;;  %1756 = vmatpush.msra.mxu1 %v1637_v30 }
  0xd7   :  { %v415_v1 = vpop.f32.mrf.mxu0 }
  0xd8   :  { %1741 = vmatmul.msk.f32.vlgmr.msra.gmra.mxu3 %vm20_vm0, %v2932_v2  ;;  %v3076_v31 = vadd.f32 %v444_v46, %v415_v1  ;;  %1757 = vmatpush.msra.mxu1 %v1633_v53 }
  0xd9   :  { %1181 = vmatmul.f32.vlgmr.msra.gmra.mxu1 %v2957_v15 }
  0xda   :  { %1178 = vmatmul.f32.gmra.mxu0 %v2900_v3  ;;  %v451_v3 = vadd.f32 %v2903_v56, %v103_v17 }
  0xdb   :  { %v650_v40 = vpop.f32.mrf.mxu3 }
  0xdc   :  { %v651_v12 = vadd.f32 %v650_v40, %v621_v0 }
  0xde   :  { %v3081_v48 = vadd.f32 %v651_v12, %v450_v5  ;;  %v447_v8 = vpop.f32.mrf.mxu2  ;;  %v624_v7 = vpop.f32.mrf.mxu1 }
  0xdf   :  { %v418_v2 = vpop.f32.mrf.mxu0 }
  0xe0   :  { %v3083_v9 = vadd.f32 %v447_v8, %v418_v2  ;;  %v464_v2 = vadd.f32 %v3063_v63, %v3109_v33 }
  0xe2   :  { %v465_v63 = vadd.f32 %v3083_v9, %v3127_v43 }
  0xe3   :  { %v653_v10 = vpop.f32.mrf.mxu3 }
  0xe4   :  { %v654_v16 = vadd.f32 %v653_v10, %v624_v7 }
  0xe6   :  { %v3087_v18 = vadd.f32 %v654_v16, %v454_v14  ;;  %v627_v15 = vpop.f32.mrf.mxu1  ;;  %v708_v41 = vpop.f32.mrf.mxu2 }
  0xe7   :  { %v679_v54 = vpop.f32.mrf.mxu0 }
  0xe8   :  { %v709_v19 = vadd.f32 %v708_v41, %v679_v54 }
  0xea   :  { %v3091_v59 = vadd.f32 %v709_v19, %v451_v3 }
  0xeb   :  { %v656_v20 = vpop.f32.mrf.mxu3 }
  0xec   :  { %v657_v34 = vadd.f32 %v656_v20, %v627_v15 }
  0xee   :  { %v3093_v24 = vadd.f32 %v657_v34, %v458_v22  ;;  %v630_v58 = vpop.f32.mrf.mxu1  ;;  %v711_v26 = vpop.f32.mrf.mxu2 }
  0xef   :  { %v682_v27 = vpop.f32.mrf.mxu0 }
  0xf0   :  { %v712_v32 = vadd.f32 %v711_v26, %v682_v27 }
  0xf2   :  { %v3097_v56 = vadd.f32 %v712_v32, %v455_v29 }
  0xf3   :  { %v659_v37 = vpop.f32.mrf.mxu3 }
  0xf4   :  { %v660_v51 = vadd.f32 %v659_v37, %v630_v58 }
  0xf6   :  { %v3099_v21 = vadd.f32 %v660_v51, %v462_v42  ;;  %v714_v13 = vpop.f32.mrf.mxu2  ;;  %v3101_v38 = vpop.f32.mrf.mxu1 }
  0xf7   :  { %v685_v44 = vpop.f32.mrf.mxu0 }
  0xf8   :  { %v715_v50 = vadd.f32 %v714_v13, %v685_v44 }
  0xfa   :  { %v3106_v47 = vadd.f32 %v715_v50, %v459_v45 }
  0xfb   :  { %v3104_v30 = vpop.f32.mrf.mxu3 }
  0xfe   :  { %v717_v25 = vpop.f32.mrf.mxu2  ;;  %v740_v52 = vpop.f32.mrf.mxu1 }
  0xff   :  { %v688_v53 = vpop.f32.mrf.mxu0 }
 0x100   :  { %v718_v6 = vadd.f32 %v717_v25, %v688_v53 }
 0x102   :  { %v3114_v61 = vadd.f32 %v718_v6, %v463_v55 }
 0x103   :  { %v769_v39 = vpop.f32.mrf.mxu3 }
 0x104   :  { %v770_v49 = vadd.f32 %v769_v39, %v740_v52 }
 0x106   :  { %v3116_v28 = vadd.f32 %v770_v49, %v456_v60  ;;  %v3118_v23 = vpop.f32.mrf.mxu1  ;;  %v3120_v46 = vpop.f32.mrf.mxu2 }
 0x107   :  { %v3122_v0 = vpop.f32.mrf.mxu0 }
 0x10b   :  { %v3124_v1 = vpop.f32.mrf.mxu3 }
 0x10e   :  { %v746_v40 = vpop.f32.mrf.mxu1  ;;  %v827_v5 = vpop.f32.mrf.mxu2 }
 0x10f   :  { %v798_v12 = vpop.f32.mrf.mxu0 }
 0x110   :  { %v828_v8 = vadd.f32 %v827_v5, %v798_v12 }
 0x112   :  { %v3133_v14 = vadd.f32 %v828_v8, %v457_v36 }
 0x113   :  { %v775_v7 = vpop.f32.mrf.mxu3 }
 0x114   :  { %v776_v10 = vadd.f32 %v775_v7, %v746_v40 }
 0x116   :  { %v3135_v16 = vadd.f32 %v776_v10, %v464_v2  ;;  %v3137_v17 = vpop.f32.mrf.mxu2  ;;  %v999_v11 = vpop.f32.mrf.mxu1 }
 0x117   :  { %v3139_v15 = vpop.f32.mrf.mxu0 }
 0x11b   :  { %v1028_v41 = vpop.f32.mrf.mxu3 }
 0x11c   :  { %v1029_v54 = vadd.f32 %v1028_v41, %v999_v11  ;;  %v767_v11 = vadd.f32 %v3104_v30, %v3101_v38  ;;  %v825_v38 = vadd.f32 %v3120_v46, %v3122_v0  ;;  %v460_v46 = vadd.f32 %v3053_v4, %v3109_v33 }
 0x11e   :  { %v1214_v3 = vadd.f32 %v1029_v54, %v3081_v48  ;;  %v833_v19 = vpop.f32.mrf.mxu2  ;;  %v1002_v20 = vpop.f32.mrf.mxu1 }
 0x11f   :  { %v804_v22 = vpop.f32.mrf.mxu0 }
 0x120   :  { %v1230_v62 = vsub.f32 0.0, %v1214_v3  ;;  %v834_v58 = vadd.f32 %v833_v19, %v804_v22 }
 0x122   :  { %v1234_v34 = vmul.f32 1.442695, %v1230_v62  ;;  %v3144_v27 = vadd.f32 %v834_v58, %v465_v63 }
 0x123   :  { %v1031_v26 = vpop.f32.mrf.mxu3 }
 0x124   :  { %1767 = vpow2.f32 %v1234_v34  ;;  %v1032_v29 = vadd.f32 %v1031_v26, %v1002_v20 }
 0x126   :  { %v1218_v32 = vadd.f32 %v1032_v29, %v3087_v18  ;;  %v1005_v42 = vpop.f32.mrf.mxu1  ;;  %v1086_v51 = vpop.f32.mrf.mxu2 }
 0x127   :  { %v1057_v48 = vpop.f32.mrf.mxu0 }
 0x128   :  { %v1231_v37 = vsub.f32 0.0, %v1218_v32  ;;  %v1087_v45 = vadd.f32 %v1086_v51, %v1057_v48  ;;  %v773_v32 = vadd.f32 %v3124_v1, %v3118_v23  ;;  %v453_v51 = vadd.f32 %v3050_v57, %v3127_v43 }
 0x129   :  { %v831_v48 = vadd.f32 %v3137_v17, %v3139_v15  ;;  %v461_v23 = vadd.f32 %v3076_v31, %v3127_v43 }
 0x12a   :  { %v1768_v13 = vpop.eup %1767  ;;  %v1236_v44 = vmul.f32 1.442695, %v1231_v37  ;;  %v1215_v52 = vadd.f32 %v1087_v45, %v3091_v59  ;;  %v3185_v1 = vadd.f32 %v825_v38, %v453_v51  ;;  %v3189_v45 = vadd.f32 %v773_v32, %v460_v46 }
 0x12b   :  { %v3147_v50 = vadd.f32 1.0, %v1768_v13  ;;  %v1034_v25 = vpop.f32.mrf.mxu3 }
 0x12c   :  { %1769 = vpow2.f32 %v1236_v44  ;;  %v1035_v9 = vadd.f32 %v1034_v25, %v1005_v42  ;;  %v1306_v55 = vsub.f32 0.0, %v1215_v52 }
 0x12d   :  { %1771 = vrcp.f32 %v3147_v50  ;;  %vm1251_vm7 = vweird.f32 %v3147_v50 }
 0x12e   :  { %v1222_v53 = vadd.f32 %v1035_v9, %v3093_v24  ;;  %v1310_v6 = vmul.f32 1.442695, %v1306_v55  ;;  %v1008_v39 = vpop.f32.mrf.mxu1  ;;  %v1089_v60 = vpop.f32.mrf.mxu2 }
 0x12f   :  { %v1060_v49 = vpop.f32.mrf.mxu0 }
 0x130   :  { %v1232_v18 = vsub.f32 0.0, %v1222_v53  ;;  %1773 = vpow2.f32 %v1310_v6  ;;  %v1090_v12 = vadd.f32 %v1089_v60, %v1060_v49  ;;  %v1255_v53 = vand.u32 2147483647, %v3147_v50 }
 0x131   :  { %v1257_v6 = vand.u32 2147483648, %v3147_v50 }
 0x132   :  { %v1770_v40 = vpop.eup %1769  ;;  %v1238_v5 = vmul.f32 1.442695, %v1232_v18  ;;  %v1219_v59 = vadd.f32 %v1090_v12, %v3097_v56  ;;  %v452_v56 = vadd.f32 %v3009_v35, %v3109_v33  ;;  %v3194_v33 = vadd.f32 %v831_v48, %v461_v23 }
 0x133   :  { %v3152_v36 = vadd.f32 1.0, %v1770_v40  ;;  %v1037_v8 = vpop.f32.mrf.mxu3  ;;  %v3155_v24 = vpop.eup %1771  ;;  %vm3208_vm9 = vcmp.eq.f32.partialorder %v1255_v53, 8.507059e+37 }
 0x134   :  { %1775 = vpow2.f32 %v1238_v5  ;;  %v1038_v7 = vadd.f32 %v1037_v8, %v1008_v39  ;;  %v1307_v10 = vsub.f32 0.0, %v1219_v59  ;;  %v1247_v54 = vmul.f32 %v3155_v24, %v3147_v50 }
 0x135   :  { %1777 = vrcp.f32 %v3152_v36  ;;  %v838_v26 = vadd.f32 %v767_v11, %v452_v56  ;;  %v1272_v40 = vand.u32 2147483648, %v3152_v36  ;;  %vm1252_vm8 = vweird.f32 %v3155_v24 }
 0x136   :  { %v1226_v2 = vadd.f32 %v1038_v7, %v3099_v21  ;;  %v1774_v41 = vpop.eup %1773  ;;  %v1312_v62 = vmul.f32 1.442695, %v1307_v10  ;;  %v1092_v19 = vpop.f32.mrf.mxu2  ;;  %v1248_v35 = vsub.f32 1.0, %v1247_v54  ;;  %vm1266_vm10 = vweird.f32 %v3152_v36  ;;  %vm3223_vm12 = vmor %vm1251_vm7, %vm1252_vm8 }
 0x137   :  { %v1115_v20 = vpop.f32.mrf.mxu1  ;;  %v3165_v22 = vadd.f32 1.0, %v1774_v41  ;;  %v1063_v63 = vpop.f32.mrf.mxu0  ;;  %v1258_v41 = vor.u32 1.1754944e-38, %v1257_v6 }
 0x138   :  { %v1233_v3 = vsub.f32 0.0, %v1226_v2  ;;  %1779 = vpow2.f32 %v1312_v62  ;;  %v1093_v58 = vadd.f32 %v1092_v19, %v1063_v63  ;;  %v1249_v52 = vmul.f32 %v3155_v24, %v1248_v35 }
 0x139   :  { %1781 = vrcp.f32 %v3165_v22  ;;  %v1270_v2 = vand.u32 2147483647, %v3152_v36  ;;  %vm1327_vm11 = vweird.f32 %v3165_v22 }
 0x13a   :  { %v1776_v34 = vpop.eup %1775  ;;  %v1240_v21 = vmul.f32 1.442695, %v1233_v3  ;;  %v1223_v37 = vadd.f32 %v1093_v58, %v3106_v47  ;;  %v1250_v12 = vadd.f32 %v3155_v24, %v1249_v52 }
 0x13b   :  { %v1144_v30 = vpop.f32.mrf.mxu3  ;;  %v3170_v29 = vpop.eup %1777  ;;  %v3179_v13 = vadd.f32 1.0, %v1776_v34  ;;  %vm3239_vm14 = vcmp.eq.f32.partialorder %v1270_v2, 8.507059e+37 }
 0x13c   :  { %v1145_v42 = vadd.f32 %v1144_v30, %v1115_v20  ;;  %1783 = vpow2.f32 %v1240_v21  ;;  %v1308_v0 = vsub.f32 0.0, %v1223_v37  ;;  %v1262_v47 = vmul.f32 %v3170_v29, %v3152_v36 }
 0x13d   :  { %1785 = vrcp.f32 %v3179_v13  ;;  %v1273_v20 = vor.u32 1.1754944e-38, %v1272_v40  ;;  %v1254_v58 = vsel %vm3223_vm12, %v3155_v24, %v1250_v12  ;;  %vm1267_vm13 = vweird.f32 %v3170_v29 }
 0x13e   :  { %v1216_v44 = vadd.f32 %v1145_v42, %v838_v26  ;;  %v1780_v57 = vpop.eup %1779  ;;  %v1314_v17 = vmul.f32 1.442695, %v1308_v0  ;;  %v1095_v25 = vpop.f32.mrf.mxu2  ;;  %v1263_v60 = vsub.f32 1.0, %v1262_v47  ;;  %v1259_v52 = vsel %vm3208_vm9, %v1258_v41, %v1254_v58  ;;  %vm3263_vm0 = vmor %vm1266_vm10, %vm1267_vm13 }
 0x13f   :  { %v1118_v9 = vpop.f32.mrf.mxu1  ;;  %v3192_v4 = vpop.eup %1781  ;;  %v3197_v31 = vadd.f32 1.0, %v1780_v57  ;;  %v1285_v40 = vand.u32 2147483647, %v3179_v13  ;;  %vm1281_vm7 = vweird.f32 %v3179_v13 }
 0x140   :  { %v1382_v15 = vsub.f32 0.0, %v1216_v44  ;;  %v1066_v43 = vpop.f32.mrf.mxu0  ;;  %v1323_v55 = vmul.f32 %v3192_v4, %v3165_v22  ;;  %1787 = vpow2.f32 %v1314_v17  ;;  %v1264_v19 = vmul.f32 %v3170_v29, %v1263_v60 }
 0x141   :  { %1789 = vrcp.f32 %v3197_v31  ;;  %v1096_v5 = vadd.f32 %v1095_v25, %v1066_v43  ;;  %v1348_v47 = vand.u32 2147483648, %v3197_v31  ;;  %vm1328_vm15 = vweird.f32 %v3192_v4 }
 0x142   :  { %v1386_v18 = vmul.f32 1.442695, %v1382_v15  ;;  %v1784_v39 = vpop.eup %1783  ;;  %v1324_v8 = vsub.f32 1.0, %v1323_v55  ;;  %v1265_v44 = vadd.f32 %v3170_v29, %v1264_v19  ;;  %v1287_v15 = vand.u32 2147483648, %v3179_v13  ;;  %vm3279_vm2 = vmor %vm1327_vm11, %vm1328_vm15 }
 0x143   :  { %v1147_v49 = vpop.f32.mrf.mxu3  ;;  %v3213_v10 = vadd.f32 1.0, %v1784_v39  ;;  %v1227_v11 = vadd.f32 %v1096_v5, %v3114_v61  ;;  %v3217_v54 = vpop.eup %1785  ;;  %v1333_v61 = vand.u32 2147483648, %v3165_v22  ;;  %vm1342_vm3 = vweird.f32 %v3197_v31 }
 0x144   :  { %1791 = vpow2.f32 %v1386_v18  ;;  %v1148_v7 = vadd.f32 %v1147_v49, %v1118_v9  ;;  %v1325_v26 = vmul.f32 %v3192_v4, %v1324_v8  ;;  %v1277_v24 = vmul.f32 %v3217_v54, %v3179_v13 }
 0x145   :  { %v1309_v63 = vsub.f32 0.0, %v1227_v11  ;;  %1793 = vrcp.f32 %v3213_v10  ;;  %v1334_v23 = vor.u32 1.1754944e-38, %v1333_v61  ;;  %v1269_v6 = vsel %vm3263_vm0, %v3170_v29, %v1265_v44 }
 0x146   :  { %v1220_v3 = vadd.f32 %v1148_v7, %v3116_v28  ;;  %v1788_v56 = vpop.eup %1787  ;;  %v1202_v21 = vpop.f32.mrf.mxu2  ;;  %v1331_v28 = vand.u32 2147483647, %v3165_v22  ;;  %v1326_v17 = vadd.f32 %v3192_v4, %v1325_v26  ;;  %v1278_v25 = vsub.f32 1.0, %v1277_v24  ;;  %v1462_v26 = vld [vmem:[%s3528_s1] sm:$0xff] }
 0x147   :  { %v1121_v34 = vpop.f32.mrf.mxu1  ;;  %v3233_v50 = vpop.eup %1789  ;;  %v3236_v38 = vadd.f32 1.0, %v1788_v56  ;;  %v1316_v51 = vmul.f32 1.442695, %v1309_v63  ;;  %v3284_v60 = vor.u32 1.1754944e-38, %v1348_v47  ;;  %v1346_v49 = vand.u32 2147483647, %v3197_v31 }
 0x148   :  { %v1383_v30 = vsub.f32 0.0, %v1220_v3  ;;  %v1173_v32 = vpop.f32.mrf.mxu0  ;;  %v1338_v42 = vmul.f32 %v3233_v50, %v3197_v31  ;;  %vm3268_vm1 = vcmp.eq.f32.partialorder %v1331_v28, 8.507059e+37  ;;  %v1330_v22 = vsel %vm3279_vm2, %v3192_v4, %v1326_v17 }
 0x149   :  { %1795 = vrcp.f32 %v3236_v38  ;;  %v1203_v0 = vadd.f32 %v1202_v21, %v1173_v32  ;;  %v3294_v7 = vor.u32 1.1754944e-38, %v1287_v15  ;;  %v3301_v41 = vsel %vm3239_vm14, %v1273_v20, %v1269_v6 }
 0x14a   :  { %v1792_v37 = vpop.eup %1791  ;;  %1797 = vpow2.f32 %v1316_v51  ;;  %v1388_v57 = vmul.f32 1.442695, %v1383_v30  ;;  %v1339_v9 = vsub.f32 1.0, %v1338_v42  ;;  %vm1343_vm4 = vweird.f32 %v3233_v50 }
 0x14b   :  { %v3249_v48 = vadd.f32 1.0, %v1792_v37  ;;  %v1150_v46 = vpop.f32.mrf.mxu3  ;;  %v1217_v55 = vadd.f32 %v1203_v0, %v3185_v1  ;;  %v3275_v39 = vpop.eup %1793  ;;  %v1363_v4 = vand.u32 2147483648, %v3236_v38  ;;  %vm1282_vm5 = vweird.f32 %v3217_v54  ;;  %vm3344_vm10 = vmor %vm1342_vm3, %vm1343_vm4 }
 0x14c   :  { %v1151_v53 = vadd.f32 %v1150_v46, %v1121_v34  ;;  %v1340_v2 = vmul.f32 %v3233_v50, %v1339_v9  ;;  %v3312_v63 = vmul.f32 %v3275_v39, %v3213_v10  ;;  %v1335_v34 = vsel %vm3268_vm1, %v1334_v23, %v1330_v22  ;;  %vm3406_vm0 = vmor %vm1281_vm7, %vm1282_vm5 }
 0x14d   :  { %1799 = vrcp.f32 %v3249_v48  ;;  %vm3325_vm6 = vcmp.eq.f32.partialorder %v1346_v49, 8.507059e+37  ;;  %vm1357_vm8 = vweird.f32 %v3236_v38  ;;  %v3333_v46 = vor.u32 1.1754944e-38, %v1363_v4 }
 0x14e   :  { %1801 = vpow2.f32 %v1388_v57  ;;  %v1205_v1 = vpop.f32.mrf.mxu2  ;;  %v1224_v29 = vadd.f32 %v1151_v53, %v3189_v45  ;;  %v1279_v45 = vmul.f32 %v3217_v54, %v1278_v25  ;;  %v1341_v42 = vadd.f32 %v3233_v50, %v1340_v2 }
 0x14f   :  { %v3288_v5 = vpop.eup %1795  ;;  %1803 = vtanh.f32 %v1217_v55  ;;  %v1124_v12 = vpop.f32.mrf.mxu1  ;;  %vm1403_vm9 = vweird.f32 %v3249_v48  ;;  %v1407_v0 = vand.u32 2147483647, %v3249_v48  ;;  %v1466_v23 = vmul.f32 %v1462_v26, %v1335_v34 }
 0x150   :  { %v1176_v8 = vpop.f32.mrf.mxu0  ;;  %v1798_v59 = vpop.eup %1797  ;;  %v1353_v11 = vmul.f32 %v3288_v5, %v3236_v38  ;;  %v1384_v19 = vsub.f32 0.0, %v1224_v29  ;;  %v1293_v57 = vsub.f32 1.0, %v3312_v63  ;;  %v1409_v53 = vand.u32 2147483648, %v3249_v48 }
 0x151   :  { %v3308_v62 = vadd.f32 1.0, %v1798_v59  ;;  %v1206_v30 = vadd.f32 %v1205_v1, %v1176_v8  ;;  %v1345_v55 = vsel %vm3344_vm10, %v3233_v50, %v1341_v42  ;;  %vm3358_vm12 = vcmp.eq.f32.partialorder %v1407_v0, 8.507059e+37  ;;  %v1465_v59 = vld [vmem:[%s3528_s1 + $0x18] sm:$0xff] }
 0x152   :  { %v1354_v58 = vsub.f32 1.0, %v1353_v11  ;;  %v1390_v37 = vmul.f32 1.442695, %v1384_v19  ;;  %v1280_v50 = vadd.f32 %v3217_v54, %v1279_v45  ;;  %vm3370_vm13 = vcmp.eq.f32.partialorder %v1285_v40, 8.507059e+37 }
 0x153   :  { %v3304_v3 = vpop.eup %1799  ;;  %v1153_v56 = vpop.f32.mrf.mxu3  ;;  %1805 = vrcp.f32 %v3308_v62  ;;  %v1221_v9 = vadd.f32 %v1206_v30, %v3133_v14  ;;  %vm1358_vm14 = vweird.f32 %v3288_v5  ;;  %v1350_v11 = vsel %vm3325_vm6, %v3284_v60, %v1345_v55 }
 0x154   :  { %v1802_v61 = vpop.eup %1801  ;;  %v1399_v20 = vmul.f32 %v3304_v3, %v3249_v48  ;;  %v1154_v21 = vadd.f32 %v1153_v56, %v1124_v12  ;;  %v1355_v15 = vmul.f32 %v3288_v5, %v1354_v58  ;;  %vm1404_vm11 = vweird.f32 %v3304_v3  ;;  %vm3414_vm1 = vmor %vm1357_vm8, %vm1358_vm14 }
 0x155   :  { %v3320_v28 = vadd.f32 1.0, %v1802_v61  ;;  %v1804_v51 = vpop.eup %1803  ;;  %vm3383_vm15 = vmor %vm1403_vm9, %vm1404_vm11  ;;  %v1361_v45 = vand.u32 2147483647, %v3236_v38  ;;  %v1378_v4 = vand.u32 2147483648, %v3308_v62  ;;  %vm1372_vm2 = vweird.f32 %v3308_v62 }
 0x156   :  { %v1400_v35 = vsub.f32 1.0, %v1399_v20  ;;  %v1228_v24 = vadd.f32 %v1154_v21, %v3135_v16  ;;  %v1470_v16 = vmul.f32 %v1804_v51, %v1259_v52  ;;  %v1208_v47 = vpop.f32.mrf.mxu2  ;;  %v1356_v12 = vadd.f32 %v3288_v5, %v1355_v15 }
 0x157   :  { %1807 = vrcp.f32 %v3320_v28  ;;  %v1182_v56 = vpop.f32.mrf.mxu1  ;;  %v1410_v20 = vor.u32 1.1754944e-38, %v1409_v53  ;;  %v1284_v13 = vsel %vm3406_vm0, %v3217_v54, %v1280_v50  ;;  %v1379_v42 = vor.u32 1.1754944e-38, %v1378_v4 }
 0x158   :  { %v1401_v44 = vmul.f32 %v3304_v3, %v1400_v35  ;;  %1809 = vpow2.f32 %v1390_v37  ;;  %v1385_v25 = vsub.f32 0.0, %v1228_v24  ;;  %v1179_v43 = vpop.f32.mrf.mxu0  ;;  %v1474_v52 = vadd.f32 %v1470_v16, %v1466_v23 }
 0x159   :  { %v1209_v18 = vadd.f32 %v1208_v47, %v1179_v43  ;;  %v3354_v6 = vpop.eup %1805  ;;  %1811 = vtanh.f32 %v1221_v9  ;;  %v1360_v38 = vsel %vm3414_vm1, %v3288_v5, %v1356_v12  ;;  %v1422_v51 = vand.u32 2147483647, %v3320_v28 }
 0x15a   :  { %v1402_v31 = vadd.f32 %v3304_v3, %v1401_v44  ;;  %v1392_v36 = vmul.f32 1.442695, %v1385_v25  ;;  %v1368_v14 = vmul.f32 %v3354_v6, %v3308_v62  ;;  %1813 = vtanh.f32 %v1474_v52  ;;  %1490 = vst [vmem:[%s3529_s5] sm:$0xff] %v1474_v52 }
 0x15b   :  { %v1225_v22 = vadd.f32 %v1209_v18, %v3194_v33  ;;  %v1463_v33 = vld [vmem:[%s3528_s1 + $0x8] sm:$0xff]  ;;  %v1211_v61 = vpop.f32.mrf.mxu3  ;;  %vm1362_vm3 = vcmp.eq.f32.partialorder %v1361_v45, 8.507059e+37  ;;  %vm1296_vm4 = vweird.f32 %v3213_v10  ;;  %v1424_v44 = vand.u32 2147483648, %v3320_v28 }
 0x15c   :  { %1815 = vpow2.f32 %v1392_v36  ;;  %v1369_v40 = vsub.f32 1.0, %v1368_v14  ;;  %v1406_v48 = vsel %vm3383_vm15, %v3304_v3, %v1402_v31  ;;  %v1467_v26 = vmul.f32 %v1463_v33, %v1350_v11 }
 0x15d   :  { %v3374_v29 = vpop.eup %1807  ;;  %1817 = vtanh.f32 %v1225_v22  ;;  %v1411_v32 = vsel %vm3358_vm12, %v1410_v20, %v1406_v48  ;;  %v1212_v24 = vadd.f32 %v1211_v61, %v1182_v56  ;;  %v1365_v16 = vsel %vm1362_vm3, %v3333_v46, %v1360_v38 }
 0x15e   :  { %v1810_v8 = vpop.eup %1809  ;;  %v1414_v2 = vmul.f32 %v3374_v29, %v3320_v28  ;;  %v1370_v58 = vmul.f32 %v3354_v6, %v1369_v40  ;;  %vm1373_vm5 = vweird.f32 %v3354_v6  ;;  %v1289_v17 = vsel %vm3370_vm13, %v3294_v7, %v1284_v13 }
 0x15f   :  { %v3400_v19 = vadd.f32 1.0, %v1810_v8  ;;  %v1812_v21 = vpop.eup %1811  ;;  %v1294_v15 = vmul.f32 %v3275_v39, %v1293_v57  ;;  %vm1419_vm6 = vweird.f32 %v3374_v29  ;;  %v1229_v9 = vadd.f32 %v1212_v24, %v3144_v27  ;;  %vm3463_vm7 = vmor %vm1372_vm2, %vm1373_vm5 }
 0x160   :  { %v1415_v34 = vsub.f32 1.0, %v1414_v2  ;;  %v1814_v30 = vpop.eup %1813  ;;  %v1471_v37 = vmul.f32 %v1812_v21, %v3301_v41  ;;  %v1464_v41 = vld [vmem:[%s3528_s1 + $0x10] sm:$0xff]  ;;  %v1371_v46 = vadd.f32 %v3354_v6, %v1370_v58  ;;  %v1376_v57 = vand.u32 2147483647, %v3308_v62 }
 0x161   :  { %1819 = vrcp.f32 %v3400_v19  ;;  %v1482_v0 = vmul.f32 %v1814_v30, %v1411_v32  ;;  %v1468_v7 = vmul.f32 %v1464_v41, %v1365_v16  ;;  %vm1418_vm8 = vweird.f32 %v3320_v28 }
 0x162   :  { %v1416_v35 = vmul.f32 %v3374_v29, %v1415_v34  ;;  %v1816_v54 = vpop.eup %1815  ;;  %v1475_v23 = vadd.f32 %v1471_v37, %v1467_v26  ;;  %vm3468_vm9 = vcmp.eq.f32.partialorder %v1422_v51, 8.507059e+37  ;;  %v1425_v27 = vor.u32 1.1754944e-38, %v1424_v44  ;;  %vm3473_vm10 = vmor %vm1418_vm8, %vm1419_vm6 }
 0x163   :  { %v3434_v5 = vadd.f32 1.0, %v1816_v54  ;;  %v1818_v47 = vpop.eup %1817  ;;  %1486 = vst [vmem:[%s3530_s4] sm:$0xff] %v1482_v0  ;;  %v1295_v62 = vadd.f32 %v3275_v39, %v1294_v15  ;;  %vm1297_vm11 = vweird.f32 %v3275_v39  ;;  %v1375_v28 = vsel %vm3463_vm7, %v3354_v6, %v1371_v46 }
 0x164   :  { %v1417_v25 = vadd.f32 %v3374_v29, %v1416_v35  ;;  %1491 = vst [vmem:[%s3529_s5 + $0x8] sm:$0xff] %v1475_v23  ;;  %v1472_v63 = vmul.f32 %v1818_v47, %v1289_v17  ;;  %v1302_v14 = vand.u32 2147483648, %v3213_v10  ;;  %v1439_v50 = vand.u32 2147483648, %v3400_v19  ;;  %vm3496_vm14 = vmor %vm1296_vm4, %vm1297_vm11 }
 0x165   :  { %1821 = vrcp.f32 %v3434_v5  ;;  %v1300_v49 = vand.u32 2147483647, %v3213_v10  ;;  %vm1377_vm12 = vcmp.eq.f32.partialorder %v1376_v57, 8.507059e+37  ;;  %v1437_v12 = vand.u32 2147483647, %v3400_v19 }
 0x166   :  { %1823 = vtanh.f32 %v1475_v23  ;;  %v1476_v31 = vadd.f32 %v1472_v63, %v1468_v7  ;;  %v1421_v36 = vsel %vm3473_vm10, %v3374_v29, %v1417_v25  ;;  %v1380_v8 = vsel %vm1377_vm12, %v1379_v42, %v1375_v28 }
 0x167   :  { %v1820_v43 = vpop.eup %1819  ;;  %1825 = vtanh.f32 %v1229_v9  ;;  %v1426_v2 = vsel %vm3468_vm9, %v1425_v27, %v1421_v36  ;;  %v1299_v33 = vsel %vm3496_vm14, %v3275_v39, %v1295_v62  ;;  %vm1433_vm15 = vweird.f32 %v3400_v19 }
 0x168   :  { %v1429_v55 = vmul.f32 %v1820_v43, %v3400_v19  ;;  %1827 = vtanh.f32 %v1476_v31  ;;  %1492 = vst [vmem:[%s3529_s5 + $0x10] sm:$0xff] %v1476_v31  ;;  %vm1434_vm13 = vweird.f32 %v1820_v43  ;;  %v1303_v48 = vor.u32 1.1754944e-38, %v1302_v14 }
 0x169   :  { %vm1435_vm0 = vmor %vm1433_vm15, %vm1434_vm13  ;;  %v1440_v4 = vor.u32 1.1754944e-38, %v1439_v50  ;;  %vm1301_vm1 = vcmp.eq.f32.partialorder %v1300_v49, 8.507059e+37  ;;  %v1469_v60 = vmul.f32 %v1465_v59, %v1380_v8  ;;  %vm1438_vm2 = vcmp.eq.f32.partialorder %v1437_v12, 8.507059e+37 }
 0x16a   :  { %v1430_v1 = vsub.f32 1.0, %v1429_v55  ;;  %v1304_v20 = vsel %vm1301_vm1, %v1303_v48, %v1299_v33  ;;  %v1454_v26 = vand.u32 2147483648, %v3434_v5  ;;  %vm1448_vm4 = vweird.f32 %v3434_v5 }
 0x16b   :  { %v1822_v22 = vpop.eup %1821  ;;  %v1452_v30 = vand.u32 2147483647, %v3434_v5 }
 0x16c   :  { %v1431_v6 = vmul.f32 %v1820_v43, %v1430_v1  ;;  %v1824_v40 = vpop.eup %1823  ;;  %v1444_v11 = vmul.f32 %v1822_v22, %v3434_v5  ;;  %vm1449_vm3 = vweird.f32 %v1822_v22  ;;  %v1455_v35 = vor.u32 1.1754944e-38, %v1454_v26 }
 0x16d   :  { %v1483_v45 = vmul.f32 %v1824_v40, %v1426_v2  ;;  %v1826_v61 = vpop.eup %1825  ;;  %vm1450_vm5 = vmor %vm1448_vm4, %vm1449_vm3  ;;  %vm1453_vm6 = vcmp.eq.f32.partialorder %v1452_v30, 8.507059e+37 }
 0x16e   :  { %v1432_v10 = vadd.f32 %v1820_v43, %v1431_v6  ;;  %v1445_v56 = vsub.f32 1.0, %v1444_v11  ;;  %v1828_v34 = vpop.eup %1827  ;;  %v1473_v21 = vmul.f32 %v1826_v61, %v1304_v20 }
 0x16f   :  { %1487 = vst [vmem:[%s3530_s4 + $0x8] sm:$0xff] %v1483_v45 }
 0x170   :  { %v1436_v3 = vsel %vm1435_vm0, %v1820_v43, %v1432_v10  ;;  %v1446_v13 = vmul.f32 %v1822_v22, %v1445_v56  ;;  %v1477_v38 = vadd.f32 %v1473_v21, %v1469_v60 }
 0x171   :  { %v1441_v39 = vsel %vm1438_vm2, %v1440_v4, %v1436_v3 }
 0x172   :  { %v1484_v19 = vmul.f32 %v1828_v34, %v1441_v39  ;;  %v1447_v58 = vadd.f32 %v1822_v22, %v1446_v13  ;;  %1829 = vtanh.f32 %v1477_v38  ;;  %1493 = vst [vmem:[%s3529_s5 + $0x18] sm:$0xff] %v1477_v38 }
 0x174   :  { %1488 = vst [vmem:[%s3530_s4 + $0x10] sm:$0xff] %v1484_v19  ;;  %v1451_v32 = vsel %vm1450_vm5, %v1822_v22, %v1447_v58 }
 0x175   :  { %v1456_v37 = vsel %vm1453_vm6, %v1455_v35, %v1451_v32 }
 0x178   :  { %v1830_v24 = vpop.eup %1829 }
 0x179   :  { %v1485_v54 = vmul.f32 %v1830_v24, %v1456_v37 }
 0x17b   :  { %1489 = vst [vmem:[%s3530_s4 + $0x18] sm:$0xff] %v1485_v54 }

</bundles_post_ra>
